<compile_context>
chip_gen: v5e
topology: v5e:2x2
jax: 0.10.0
libtpu: 0.0.40
codegen_flags: <defaults>
</compile_context>

<pallas_src>
import functools
from typing import NamedTuple

import jax
import jax.numpy as jnp
from jax.experimental import pallas as pl
from jax.experimental.pallas import tpu as pltpu

_LANE = 128
_PACK_LANES = 256      # packed output width target (fills v6e/v7x 256-wide MXU)
_MAX_ROWS = 256        # max packed rows per grid step (MXU M dim)


def _round_up(x, m):
    return ((x + m - 1) // m) * m


class PreparedTable(NamedTuple):
    hi: jax.Array        # (v_pad, e_pad) bf16: bf16(x)
    lo: jax.Array        # (v_pad, e_pad) bf16: bf16(x - f32(bf16(x)))
    vocab: int
    emb: int
    e_pad: int
    pack: int


def prepare_glove_table(glove_matrix):
    """Pad + hi/lo-split the embedding table once (model-init time)."""
    V, E = glove_matrix.shape
    table = glove_matrix.astype(jnp.float32)

    if E % _LANE == 0:
        e_pad = E
    elif E < _LANE and _LANE % E == 0:
        e_pad = E                         # packable small width (e.g. demo E=32)
    else:
        e_pad = _round_up(E, _LANE)       # e.g. real GloVe E=300 -> 384
    if e_pad < _PACK_LANES and _PACK_LANES % e_pad == 0:
        pack = _PACK_LANES // e_pad       # rows packed into a 256-lane tile
    else:
        pack = 1

    v_pad = _round_up(V, _LANE)
    hi = table.astype(jnp.bfloat16)
    lo = (table - hi.astype(jnp.float32)).astype(jnp.bfloat16)
    pad = ((0, v_pad - V), (0, e_pad - E))
    return PreparedTable(hi=jnp.pad(hi, pad), lo=jnp.pad(lo, pad),
                         vocab=V, emb=E, e_pad=e_pad, pack=pack)


def _gather_kernel(off_ref, hi_ref, lo_ref, out_ref, *, k_slab, unroll):
    """Gather one chunk of packed embedding rows.

    off_ref : (rows, pack) int32  -- vocab index of each packed slot
    hi_ref  : (v_pad, e_pad) bf16 -- VMEM-resident hi half of the table
    lo_ref  : (v_pad, e_pad) bf16 -- VMEM-resident lo half of the table
    out_ref : (rows, pack*e_pad) f32 -- lane-dense packed output rows
    """
    off = off_ref[...]                                  # (rows, pack)
    rows, pack = off.shape
    v_pad, e_pad = hi_ref.shape
    n_slab = v_pad // k_slab

    def gather_slot(j):
        idx = off[:, j:j + 1]                           # (rows, 1)

        def body(s, acc):
            start = s * k_slab
            if not isinstance(start, int):
                start = pl.multiple_of(start, _LANE)
            col = start + jax.lax.broadcasted_iota(jnp.int32, (rows, k_slab), 1)
            onehot = (col == idx).astype(jnp.bfloat16)  # 0/1: exact in bf16
            hi = hi_ref[pl.ds(start, k_slab), :]
            lo = lo_ref[pl.ds(start, k_slab), :]
            acc = acc + jnp.dot(onehot, hi, preferred_element_type=jnp.float32)
            acc = acc + jnp.dot(onehot, lo, preferred_element_type=jnp.float32)
            return acc

        init = jnp.zeros((rows, e_pad), jnp.float32)
        if n_slab == 1:
            return body(0, init)
        return jax.lax.fori_loop(0, n_slab, body, init, unroll=unroll)

    pieces = [gather_slot(j) for j in range(pack)]
    out = pieces[0] if pack == 1 else jnp.concatenate(pieces, axis=-1)
    out_ref[...] = out.astype(out_ref.dtype)            # single full-width store


def obj_embedding_lookup(inputs, table: PreparedTable, *, max_rows=_MAX_ROWS,
                         slab=512):
    """Pallas equivalent of the GloVe nn.Embedding forward: table[inputs]."""
    B, N = inputs.shape
    V, E, e_pad, pack = table.vocab, table.emb, table.e_pad, table.pack
    v_pad = table.hi.shape[0]

    # OOB-safe (PyTorch would error on OOB; we clamp — documented deviation).
    flat = jnp.clip(inputs.reshape(-1).astype(jnp.int32), 0, V - 1)
    M = flat.shape[0]

    unit = 8 * pack                   # keeps rows = chunk // pack a multiple of 8
    chunk_cap = max_rows * pack
    m_min = _round_up(M, unit)
    chunk = min(chunk_cap, m_min)
    if m_min > unit and m_min <= chunk:
        # Would otherwise be one oversized step: split so the "parallel" grid
        # axis has >=2 steps and v7x megacore can shard it across its 2 TCs.
        chunk = _round_up(pl.cdiv(m_min, 2), unit)
    m_pad = _round_up(m_min, chunk)
    num_chunks = m_pad // chunk
    rows = chunk // pack

    # Contraction slab: a multiple of 128 that divides v_pad.
    k_slab = min(slab, v_pad)
    while v_pad % k_slab:
        k_slab //= 2
    n_slab = v_pad // k_slab

    ids = jnp.pad(flat, (0, m_pad - M))   # padded tail gathers row 0; sliced off
    off = ids.reshape(num_chunks, rows, pack)

    # VMEM budget: resident hi+lo tables (== padded f32 table bytes) +
    # pipelined index/output blocks + slack for in-kernel intermediates.
    table_bytes = 2 * v_pad * e_pad * 2
    block_bytes = 2 * (rows * pack * e_pad * 4 + rows * pack * 4)
    slack_bytes = 8 * rows * k_slab
    needed = table_bytes + block_bytes + slack_bytes
    try:
        vmem_cap = int(pltpu.get_tpu_info().vmem_capacity_bytes)
    except Exception:
        vmem_cap = 64 * 1024 * 1024       # conservative: v7x per-TC VMEM
    vmem_limit = int(min(0.9 * vmem_cap, max(2 * needed, 16 * 1024 * 1024)))

    kernel = functools.partial(_gather_kernel, k_slab=k_slab,
                               unroll=bool(n_slab <= 8))

    out = pl.pallas_call(
        kernel,
        out_shape=jax.ShapeDtypeStruct((num_chunks * rows, pack * e_pad),
                                       jnp.float32),
        grid_spec=pltpu.PrefetchScalarGridSpec(
            num_scalar_prefetch=0,
            grid=(num_chunks,),
            in_specs=[
                # This chunk's packed indices (pipelined, tiny).
                pl.BlockSpec((None, rows, pack), lambda i: (i, 0, 0)),
                # Un-replicated hi/lo table halves: grid-invariant VMEM
                # residents — no per-step double-buffering.
                pl.BlockSpec(memory_space=pltpu.MemorySpace.VMEM),
                pl.BlockSpec(memory_space=pltpu.MemorySpace.VMEM),
            ],
            out_specs=pl.BlockSpec((rows, pack * e_pad), lambda i: (i, 0)),
        ),
        compiler_params=pltpu.CompilerParams(
            dimension_semantics=("parallel",),   # disjoint output rows
            vmem_limit_bytes=vmem_limit,
        ),
    )(off, table.hi, table.lo)

    # Packed (m_pad/pack, pack*e_pad) rows are row-major == (m_pad, e_pad).
    return out.reshape(m_pad, e_pad)[:M, :E].reshape(B, N, E)


if __name__ == "__main__":
    # Deterministic synthetic setup (small shapes; mirrors the GloVe lookup).
    vocab_size = 300          # must exceed padding_idx = 100
    embedding_size = 32       # small demo width (real GloVe would be 300)
    padding_idx = 100         # only affects grads in PyTorch, not forward

    key = jax.random.PRNGKey(0)
    k_glove, k_ids = jax.random.split(key)

    glove_matrix = jax.random.normal(
        k_glove, (vocab_size, embedding_size), dtype=jnp.float32
    )

    B, N = 2, 8
    inputs = jax.random.randint(k_ids, (B, N), 0, vocab_size, dtype=jnp.int32)
    inputs = inputs.at[0, -1].set(padding_idx)
    inputs = inputs.at[1, -2].set(padding_idx)

    table = prepare_glove_table(glove_matrix)   # hoisted: built once at init
    embeds = obj_embedding_lookup(inputs, table)
    jax.block_until_ready(embeds)

    # Correctness check vs. plain JAX gather (== nn.Embedding forward).
    ref = jnp.take(glove_matrix, inputs, axis=0)
    assert embeds.shape == (B, N, embedding_size)
    assert jnp.allclose(embeds, ref, rtol=1e-4, atol=1e-4), \
        "Pallas gather mismatch vs reference"

    print("KERNEL_OK")
</pallas_src>

<mosaic_0001>
module attributes {stable_mosaic.version = 11 : i64} {
  func.func @_gather_kernel(%arg0: i32, %arg1: memref<1x8x8xi32, #tpu.memory_space<vmem>>, %arg2: memref<384x32xbf16, #tpu.memory_space<vmem>>, %arg3: memref<384x32xbf16, #tpu.memory_space<vmem>>, %arg4: memref<8x256xf32, #tpu.memory_space<vmem>>) attributes {dimension_semantics = [#tpu.dimension_semantics<parallel>], iteration_bounds = array<i64: 1>, scalar_prefetch = 0 : i64, scratch_operands = 0 : i64, tpu.core_type = #tpu.core_type<tc>, window_params = [{transform_indices = @transform_0, window_bounds = array<i64: 1, 8, 8>}, {pipeline_mode = #tpu.pipeline_mode<synchronous>, transform_indices = @transform_1, window_bounds = array<i64: 384, 32>}, {pipeline_mode = #tpu.pipeline_mode<synchronous>, transform_indices = @transform_2, window_bounds = array<i64: 384, 32>}, {transform_indices = @transform_3, window_bounds = array<i64: 8, 256>}]} {
    %c0 = arith.constant 0 : index
    %c0_0 = arith.constant 0 : index
    %c0_1 = arith.constant 0 : index
    %0 = vector.load %arg1[%c0, %c0_0, %c0_1] : memref<1x8x8xi32, #tpu.memory_space<vmem>>, vector<1x8x8xi32>
    %1 = vector.shape_cast %0 : vector<1x8x8xi32> to vector<8x8xi32>
    %2 = vector.extract_strided_slice %1 {offsets = [0, 0], sizes = [8, 1], strides = [1, 1]} : vector<8x8xi32> to vector<8x1xi32>
    %cst = arith.constant 0.000000e+00 : f32
    %3 = vector.broadcast %cst : f32 to vector<8x32xf32>
    %4 = tpu.iota {dimensions = array<i32: 1>} : vector<8x384xi32>
    %c0_i32 = arith.constant 0 : i32
    %5 = vector.broadcast %c0_i32 : i32 to vector<8x384xi32>
    %6 = arith.addi %5, %4 : vector<8x384xi32>
    %7 = vector.broadcast %2 : vector<8x1xi32> to vector<8x384xi32>
    %8 = arith.cmpi eq, %6, %7 : vector<8x384xi32>
    %9 = arith.extui %8 : vector<8x384xi1> to vector<8x384xi32>
    %10 = arith.sitofp %9 : vector<8x384xi32> to vector<8x384xf32>
    %11 = arith.truncf %10 : vector<8x384xf32> to vector<8x384xbf16>
    %c0_2 = arith.constant 0 : index
    %c0_3 = arith.constant 0 : index
    %12 = vector.load %arg2[%c0_2, %c0_3] : memref<384x32xbf16, #tpu.memory_space<vmem>>, vector<384x32xbf16>
    %c0_4 = arith.constant 0 : index
    %c0_5 = arith.constant 0 : index
    %13 = vector.load %arg3[%c0_4, %c0_5] : memref<384x32xbf16, #tpu.memory_space<vmem>>, vector<384x32xbf16>
    %cst_6 = arith.constant dense<0.000000e+00> : vector<8x32xf32>
    %14 = tpu.matmul %11, %12, %cst_6 {dimension_numbers = #tpu.dot_dimension_numbers<[1], [0], [0], [1], [0, 0, 1, 1], [], []>} : vector<8x384xbf16>, vector<384x32xbf16>, vector<8x32xf32> -> vector<8x32xf32>
    %15 = arith.addf %3, %14 : vector<8x32xf32>
    %cst_7 = arith.constant dense<0.000000e+00> : vector<8x32xf32>
    %16 = tpu.matmul %11, %13, %cst_7 {dimension_numbers = #tpu.dot_dimension_numbers<[1], [0], [0], [1], [0, 0, 1, 1], [], []>} : vector<8x384xbf16>, vector<384x32xbf16>, vector<8x32xf32> -> vector<8x32xf32>
    %17 = arith.addf %15, %16 : vector<8x32xf32>
    %18 = vector.extract_strided_slice %1 {offsets = [0, 1], sizes = [8, 1], strides = [1, 1]} : vector<8x8xi32> to vector<8x1xi32>
    %cst_8 = arith.constant 0.000000e+00 : f32
    %19 = vector.broadcast %cst_8 : f32 to vector<8x32xf32>
    %20 = tpu.iota {dimensions = array<i32: 1>} : vector<8x384xi32>
    %c0_i32_9 = arith.constant 0 : i32
    %21 = vector.broadcast %c0_i32_9 : i32 to vector<8x384xi32>
    %22 = arith.addi %21, %20 : vector<8x384xi32>
    %23 = vector.broadcast %18 : vector<8x1xi32> to vector<8x384xi32>
    %24 = arith.cmpi eq, %22, %23 : vector<8x384xi32>
    %25 = arith.extui %24 : vector<8x384xi1> to vector<8x384xi32>
    %26 = arith.sitofp %25 : vector<8x384xi32> to vector<8x384xf32>
    %27 = arith.truncf %26 : vector<8x384xf32> to vector<8x384xbf16>
    %c0_10 = arith.constant 0 : index
    %c0_11 = arith.constant 0 : index
    %28 = vector.load %arg2[%c0_10, %c0_11] : memref<384x32xbf16, #tpu.memory_space<vmem>>, vector<384x32xbf16>
    %c0_12 = arith.constant 0 : index
    %c0_13 = arith.constant 0 : index
    %29 = vector.load %arg3[%c0_12, %c0_13] : memref<384x32xbf16, #tpu.memory_space<vmem>>, vector<384x32xbf16>
    %cst_14 = arith.constant dense<0.000000e+00> : vector<8x32xf32>
    %30 = tpu.matmul %27, %28, %cst_14 {dimension_numbers = #tpu.dot_dimension_numbers<[1], [0], [0], [1], [0, 0, 1, 1], [], []>} : vector<8x384xbf16>, vector<384x32xbf16>, vector<8x32xf32> -> vector<8x32xf32>
    %31 = arith.addf %19, %30 : vector<8x32xf32>
    %cst_15 = arith.constant dense<0.000000e+00> : vector<8x32xf32>
    %32 = tpu.matmul %27, %29, %cst_15 {dimension_numbers = #tpu.dot_dimension_numbers<[1], [0], [0], [1], [0, 0, 1, 1], [], []>} : vector<8x384xbf16>, vector<384x32xbf16>, vector<8x32xf32> -> vector<8x32xf32>
    %33 = arith.addf %31, %32 : vector<8x32xf32>
    %34 = vector.extract_strided_slice %1 {offsets = [0, 2], sizes = [8, 1], strides = [1, 1]} : vector<8x8xi32> to vector<8x1xi32>
    %cst_16 = arith.constant 0.000000e+00 : f32
    %35 = vector.broadcast %cst_16 : f32 to vector<8x32xf32>
    %36 = tpu.iota {dimensions = array<i32: 1>} : vector<8x384xi32>
    %c0_i32_17 = arith.constant 0 : i32
    %37 = vector.broadcast %c0_i32_17 : i32 to vector<8x384xi32>
    %38 = arith.addi %37, %36 : vector<8x384xi32>
    %39 = vector.broadcast %34 : vector<8x1xi32> to vector<8x384xi32>
    %40 = arith.cmpi eq, %38, %39 : vector<8x384xi32>
    %41 = arith.extui %40 : vector<8x384xi1> to vector<8x384xi32>
    %42 = arith.sitofp %41 : vector<8x384xi32> to vector<8x384xf32>
    %43 = arith.truncf %42 : vector<8x384xf32> to vector<8x384xbf16>
    %c0_18 = arith.constant 0 : index
    %c0_19 = arith.constant 0 : index
    %44 = vector.load %arg2[%c0_18, %c0_19] : memref<384x32xbf16, #tpu.memory_space<vmem>>, vector<384x32xbf16>
    %c0_20 = arith.constant 0 : index
    %c0_21 = arith.constant 0 : index
    %45 = vector.load %arg3[%c0_20, %c0_21] : memref<384x32xbf16, #tpu.memory_space<vmem>>, vector<384x32xbf16>
    %cst_22 = arith.constant dense<0.000000e+00> : vector<8x32xf32>
    %46 = tpu.matmul %43, %44, %cst_22 {dimension_numbers = #tpu.dot_dimension_numbers<[1], [0], [0], [1], [0, 0, 1, 1], [], []>} : vector<8x384xbf16>, vector<384x32xbf16>, vector<8x32xf32> -> vector<8x32xf32>
    %47 = arith.addf %35, %46 : vector<8x32xf32>
    %cst_23 = arith.constant dense<0.000000e+00> : vector<8x32xf32>
    %48 = tpu.matmul %43, %45, %cst_23 {dimension_numbers = #tpu.dot_dimension_numbers<[1], [0], [0], [1], [0, 0, 1, 1], [], []>} : vector<8x384xbf16>, vector<384x32xbf16>, vector<8x32xf32> -> vector<8x32xf32>
    %49 = arith.addf %47, %48 : vector<8x32xf32>
    %50 = vector.extract_strided_slice %1 {offsets = [0, 3], sizes = [8, 1], strides = [1, 1]} : vector<8x8xi32> to vector<8x1xi32>
    %cst_24 = arith.constant 0.000000e+00 : f32
    %51 = vector.broadcast %cst_24 : f32 to vector<8x32xf32>
    %52 = tpu.iota {dimensions = array<i32: 1>} : vector<8x384xi32>
    %c0_i32_25 = arith.constant 0 : i32
    %53 = vector.broadcast %c0_i32_25 : i32 to vector<8x384xi32>
    %54 = arith.addi %53, %52 : vector<8x384xi32>
    %55 = vector.broadcast %50 : vector<8x1xi32> to vector<8x384xi32>
    %56 = arith.cmpi eq, %54, %55 : vector<8x384xi32>
    %57 = arith.extui %56 : vector<8x384xi1> to vector<8x384xi32>
    %58 = arith.sitofp %57 : vector<8x384xi32> to vector<8x384xf32>
    %59 = arith.truncf %58 : vector<8x384xf32> to vector<8x384xbf16>
    %c0_26 = arith.constant 0 : index
    %c0_27 = arith.constant 0 : index
    %60 = vector.load %arg2[%c0_26, %c0_27] : memref<384x32xbf16, #tpu.memory_space<vmem>>, vector<384x32xbf16>
    %c0_28 = arith.constant 0 : index
    %c0_29 = arith.constant 0 : index
    %61 = vector.load %arg3[%c0_28, %c0_29] : memref<384x32xbf16, #tpu.memory_space<vmem>>, vector<384x32xbf16>
    %cst_30 = arith.constant dense<0.000000e+00> : vector<8x32xf32>
    %62 = tpu.matmul %59, %60, %cst_30 {dimension_numbers = #tpu.dot_dimension_numbers<[1], [0], [0], [1], [0, 0, 1, 1], [], []>} : vector<8x384xbf16>, vector<384x32xbf16>, vector<8x32xf32> -> vector<8x32xf32>
    %63 = arith.addf %51, %62 : vector<8x32xf32>
    %cst_31 = arith.constant dense<0.000000e+00> : vector<8x32xf32>
    %64 = tpu.matmul %59, %61, %cst_31 {dimension_numbers = #tpu.dot_dimension_numbers<[1], [0], [0], [1], [0, 0, 1, 1], [], []>} : vector<8x384xbf16>, vector<384x32xbf16>, vector<8x32xf32> -> vector<8x32xf32>
    %65 = arith.addf %63, %64 : vector<8x32xf32>
    %66 = vector.extract_strided_slice %1 {offsets = [0, 4], sizes = [8, 1], strides = [1, 1]} : vector<8x8xi32> to vector<8x1xi32>
    %cst_32 = arith.constant 0.000000e+00 : f32
    %67 = vector.broadcast %cst_32 : f32 to vector<8x32xf32>
    %68 = tpu.iota {dimensions = array<i32: 1>} : vector<8x384xi32>
    %c0_i32_33 = arith.constant 0 : i32
    %69 = vector.broadcast %c0_i32_33 : i32 to vector<8x384xi32>
    %70 = arith.addi %69, %68 : vector<8x384xi32>
    %71 = vector.broadcast %66 : vector<8x1xi32> to vector<8x384xi32>
    %72 = arith.cmpi eq, %70, %71 : vector<8x384xi32>
    %73 = arith.extui %72 : vector<8x384xi1> to vector<8x384xi32>
    %74 = arith.sitofp %73 : vector<8x384xi32> to vector<8x384xf32>
    %75 = arith.truncf %74 : vector<8x384xf32> to vector<8x384xbf16>
    %c0_34 = arith.constant 0 : index
    %c0_35 = arith.constant 0 : index
    %76 = vector.load %arg2[%c0_34, %c0_35] : memref<384x32xbf16, #tpu.memory_space<vmem>>, vector<384x32xbf16>
    %c0_36 = arith.constant 0 : index
    %c0_37 = arith.constant 0 : index
    %77 = vector.load %arg3[%c0_36, %c0_37] : memref<384x32xbf16, #tpu.memory_space<vmem>>, vector<384x32xbf16>
    %cst_38 = arith.constant dense<0.000000e+00> : vector<8x32xf32>
    %78 = tpu.matmul %75, %76, %cst_38 {dimension_numbers = #tpu.dot_dimension_numbers<[1], [0], [0], [1], [0, 0, 1, 1], [], []>} : vector<8x384xbf16>, vector<384x32xbf16>, vector<8x32xf32> -> vector<8x32xf32>
    %79 = arith.addf %67, %78 : vector<8x32xf32>
    %cst_39 = arith.constant dense<0.000000e+00> : vector<8x32xf32>
    %80 = tpu.matmul %75, %77, %cst_39 {dimension_numbers = #tpu.dot_dimension_numbers<[1], [0], [0], [1], [0, 0, 1, 1], [], []>} : vector<8x384xbf16>, vector<384x32xbf16>, vector<8x32xf32> -> vector<8x32xf32>
    %81 = arith.addf %79, %80 : vector<8x32xf32>
    %82 = vector.extract_strided_slice %1 {offsets = [0, 5], sizes = [8, 1], strides = [1, 1]} : vector<8x8xi32> to vector<8x1xi32>
    %cst_40 = arith.constant 0.000000e+00 : f32
    %83 = vector.broadcast %cst_40 : f32 to vector<8x32xf32>
    %84 = tpu.iota {dimensions = array<i32: 1>} : vector<8x384xi32>
    %c0_i32_41 = arith.constant 0 : i32
    %85 = vector.broadcast %c0_i32_41 : i32 to vector<8x384xi32>
    %86 = arith.addi %85, %84 : vector<8x384xi32>
    %87 = vector.broadcast %82 : vector<8x1xi32> to vector<8x384xi32>
    %88 = arith.cmpi eq, %86, %87 : vector<8x384xi32>
    %89 = arith.extui %88 : vector<8x384xi1> to vector<8x384xi32>
    %90 = arith.sitofp %89 : vector<8x384xi32> to vector<8x384xf32>
    %91 = arith.truncf %90 : vector<8x384xf32> to vector<8x384xbf16>
    %c0_42 = arith.constant 0 : index
    %c0_43 = arith.constant 0 : index
    %92 = vector.load %arg2[%c0_42, %c0_43] : memref<384x32xbf16, #tpu.memory_space<vmem>>, vector<384x32xbf16>
    %c0_44 = arith.constant 0 : index
    %c0_45 = arith.constant 0 : index
    %93 = vector.load %arg3[%c0_44, %c0_45] : memref<384x32xbf16, #tpu.memory_space<vmem>>, vector<384x32xbf16>
    %cst_46 = arith.constant dense<0.000000e+00> : vector<8x32xf32>
    %94 = tpu.matmul %91, %92, %cst_46 {dimension_numbers = #tpu.dot_dimension_numbers<[1], [0], [0], [1], [0, 0, 1, 1], [], []>} : vector<8x384xbf16>, vector<384x32xbf16>, vector<8x32xf32> -> vector<8x32xf32>
    %95 = arith.addf %83, %94 : vector<8x32xf32>
    %cst_47 = arith.constant dense<0.000000e+00> : vector<8x32xf32>
    %96 = tpu.matmul %91, %93, %cst_47 {dimension_numbers = #tpu.dot_dimension_numbers<[1], [0], [0], [1], [0, 0, 1, 1], [], []>} : vector<8x384xbf16>, vector<384x32xbf16>, vector<8x32xf32> -> vector<8x32xf32>
    %97 = arith.addf %95, %96 : vector<8x32xf32>
    %98 = vector.extract_strided_slice %1 {offsets = [0, 6], sizes = [8, 1], strides = [1, 1]} : vector<8x8xi32> to vector<8x1xi32>
    %cst_48 = arith.constant 0.000000e+00 : f32
    %99 = vector.broadcast %cst_48 : f32 to vector<8x32xf32>
    %100 = tpu.iota {dimensions = array<i32: 1>} : vector<8x384xi32>
    %c0_i32_49 = arith.constant 0 : i32
    %101 = vector.broadcast %c0_i32_49 : i32 to vector<8x384xi32>
    %102 = arith.addi %101, %100 : vector<8x384xi32>
    %103 = vector.broadcast %98 : vector<8x1xi32> to vector<8x384xi32>
    %104 = arith.cmpi eq, %102, %103 : vector<8x384xi32>
    %105 = arith.extui %104 : vector<8x384xi1> to vector<8x384xi32>
    %106 = arith.sitofp %105 : vector<8x384xi32> to vector<8x384xf32>
    %107 = arith.truncf %106 : vector<8x384xf32> to vector<8x384xbf16>
    %c0_50 = arith.constant 0 : index
    %c0_51 = arith.constant 0 : index
    %108 = vector.load %arg2[%c0_50, %c0_51] : memref<384x32xbf16, #tpu.memory_space<vmem>>, vector<384x32xbf16>
    %c0_52 = arith.constant 0 : index
    %c0_53 = arith.constant 0 : index
    %109 = vector.load %arg3[%c0_52, %c0_53] : memref<384x32xbf16, #tpu.memory_space<vmem>>, vector<384x32xbf16>
    %cst_54 = arith.constant dense<0.000000e+00> : vector<8x32xf32>
    %110 = tpu.matmul %107, %108, %cst_54 {dimension_numbers = #tpu.dot_dimension_numbers<[1], [0], [0], [1], [0, 0, 1, 1], [], []>} : vector<8x384xbf16>, vector<384x32xbf16>, vector<8x32xf32> -> vector<8x32xf32>
    %111 = arith.addf %99, %110 : vector<8x32xf32>
    %cst_55 = arith.constant dense<0.000000e+00> : vector<8x32xf32>
    %112 = tpu.matmul %107, %109, %cst_55 {dimension_numbers = #tpu.dot_dimension_numbers<[1], [0], [0], [1], [0, 0, 1, 1], [], []>} : vector<8x384xbf16>, vector<384x32xbf16>, vector<8x32xf32> -> vector<8x32xf32>
    %113 = arith.addf %111, %112 : vector<8x32xf32>
    %114 = vector.extract_strided_slice %1 {offsets = [0, 7], sizes = [8, 1], strides = [1, 1]} : vector<8x8xi32> to vector<8x1xi32>
    %cst_56 = arith.constant 0.000000e+00 : f32
    %115 = vector.broadcast %cst_56 : f32 to vector<8x32xf32>
    %116 = tpu.iota {dimensions = array<i32: 1>} : vector<8x384xi32>
    %c0_i32_57 = arith.constant 0 : i32
    %117 = vector.broadcast %c0_i32_57 : i32 to vector<8x384xi32>
    %118 = arith.addi %117, %116 : vector<8x384xi32>
    %119 = vector.broadcast %114 : vector<8x1xi32> to vector<8x384xi32>
    %120 = arith.cmpi eq, %118, %119 : vector<8x384xi32>
    %121 = arith.extui %120 : vector<8x384xi1> to vector<8x384xi32>
    %122 = arith.sitofp %121 : vector<8x384xi32> to vector<8x384xf32>
    %123 = arith.truncf %122 : vector<8x384xf32> to vector<8x384xbf16>
    %c0_58 = arith.constant 0 : index
    %c0_59 = arith.constant 0 : index
    %124 = vector.load %arg2[%c0_58, %c0_59] : memref<384x32xbf16, #tpu.memory_space<vmem>>, vector<384x32xbf16>
    %c0_60 = arith.constant 0 : index
    %c0_61 = arith.constant 0 : index
    %125 = vector.load %arg3[%c0_60, %c0_61] : memref<384x32xbf16, #tpu.memory_space<vmem>>, vector<384x32xbf16>
    %cst_62 = arith.constant dense<0.000000e+00> : vector<8x32xf32>
    %126 = tpu.matmul %123, %124, %cst_62 {dimension_numbers = #tpu.dot_dimension_numbers<[1], [0], [0], [1], [0, 0, 1, 1], [], []>} : vector<8x384xbf16>, vector<384x32xbf16>, vector<8x32xf32> -> vector<8x32xf32>
    %127 = arith.addf %115, %126 : vector<8x32xf32>
    %cst_63 = arith.constant dense<0.000000e+00> : vector<8x32xf32>
    %128 = tpu.matmul %123, %125, %cst_63 {dimension_numbers = #tpu.dot_dimension_numbers<[1], [0], [0], [1], [0, 0, 1, 1], [], []>} : vector<8x384xbf16>, vector<384x32xbf16>, vector<8x32xf32> -> vector<8x32xf32>
    %129 = arith.addf %127, %128 : vector<8x32xf32>
    %130 = tpu.concatenate %17, %33, %49, %65, %81, %97, %113, %129 in 1 : vector<8x32xf32>, vector<8x32xf32>, vector<8x32xf32>, vector<8x32xf32>, vector<8x32xf32>, vector<8x32xf32>, vector<8x32xf32>, vector<8x32xf32> -> vector<8x256xf32>
    %c0_64 = arith.constant 0 : index
    %c0_65 = arith.constant 0 : index
    %131 = vector.load %arg4[%c0_64, %c0_65] : memref<8x256xf32, #tpu.memory_space<vmem>>, vector<8x256xf32>
    tpu.vector_store %arg4[%c0_64, %c0_65], %130 {strides = array<i32>} : memref<8x256xf32, #tpu.memory_space<vmem>>, vector<8x256xf32>,
    return
  }
  func.func @transform_0(%arg0: i32) -> (i32, i32, i32) {
    %c0_i32 = arith.constant 0 : i32
    %c0_i32_0 = arith.constant 0 : i32
    %c0_i32_1 = arith.constant 0 : i32
    return %arg0, %c0_i32, %c0_i32_0 : i32, i32, i32
  }
  func.func @transform_1(%arg0: i32) -> (i32, i32) {
    %c0_i32 = arith.constant 0 : i32
    %c0_i32_0 = arith.constant 0 : i32
    %c0_i32_1 = arith.constant 0 : i32
    return %c0_i32, %c0_i32_0 : i32, i32
  }
  func.func @transform_2(%arg0: i32) -> (i32, i32) {
    %c0_i32 = arith.constant 0 : i32
    %c0_i32_0 = arith.constant 0 : i32
    %c0_i32_1 = arith.constant 0 : i32
    return %c0_i32, %c0_i32_0 : i32, i32
  }
  func.func @transform_3(%arg0: i32) -> (i32, i32) {
    %c0_i32 = arith.constant 0 : i32
    %c0_i32_0 = arith.constant 0 : i32
    return %arg0, %c0_i32 : i32, i32
  }
}

</mosaic_0001>

<bundles_post_ra>
// kernel: tpu_custom_call.1
= control target key start
LH: loop header
LB: loop body
LE: loop exit
PB: predicated region body
PF: predicated region fallthrough
CT: control target
= control target key end

     0   :  { %v1655_v3 = vmov 0   ;;  %v1656_v6 = vmov 2   ;;  %v1657_v15 = vmov 1   ;;  %s2668_s0 = inlined_call_operand.vmem [shape: s32[1,8,8], index: 0, kind: input, shape index: {}]   ;;  %s2669_s1 = inlined_call_operand.vmem [shape: bf16[384,32], index: 1, kind: input, shape index: {}]   ;;  %s2670_s2 = inlined_call_operand.vmem [shape: bf16[384,32], index: 2, kind: input, shape index: {}]   ;;  %s2671_s3 = inlined_call_operand.hbm [shape: f32[8,256], index: 3, kind: output, shape index: {}]  }
   0x1   :  { %v1691_v0 = vld [vmem:[%s2668_s0] sm:$0xff]  ;;  %v1696_v1 = vld [vmem:[%s2670_s2 + $0x38] sm:$0xff]  ;;  %1572 = vset.pattern.permute.xlu0 %v1655_v3  ;;  %1574 = vset.pattern.permute.xlu1 %v1656_v6  ;;  %v1718_v7 = vld [vmem:[%s2670_s2 + $0x30] sm:$0xff] }
   0x2   :  { %v1701_v2 = vld [vmem:[%s2670_s2 + $0x78] sm:$0xff]  ;;  %21 = vperm.xlu0 %1572, %v1691_v0   ;;  %275 = vmatpush.bf16.msra.mxu0 %v1696_v1  ;;  %v1725_v8 = vld [vmem:[%s2670_s2 + $0x70] sm:$0xff]  ;;  %v1743_v11 = vld [vmem:[%s2670_s2 + $0x28] sm:$0xff] }
   0x3   :  { %v1706_v4 = vld [vmem:[%s2670_s2 + $0xb8] sm:$0xff]  ;;  %288 = vmatpush.bf16.msra.mxu1 %v1701_v2  ;;  %v1730_v9 = vld [vmem:[%s2670_s2 + $0xb0] sm:$0xff]  ;;  %591 = vperm.xlu1 %1574, %v1691_v0   ;;  %v1750_v12 = vld [vmem:[%s2670_s2 + $0x68] sm:$0xff] }
   0x4   :  { %v1711_v5 = vld [vmem:[%s2669_s1 + $0x38] sm:$0xff]  ;;  %301 = vmatpush.bf16.msra.mxu2 %v1706_v4  ;;  %v1736_v10 = vld [vmem:[%s2669_s1 + $0x30] sm:$0xff]  ;;  %v1756_v13 = vld [vmem:[%s2670_s2 + $0xa8] sm:$0xff] }
   0x5   :  { %458 = vmatpush.bf16.msra.mxu3 %v1711_v5  ;;  %v1761_v14 = vld [vmem:[%s2669_s1 + $0x28] sm:$0xff]  ;;  %v1767_v16 = vld [vmem:[%s2670_s2 + $0x20] sm:$0xff] }
   0x6   :  { %276 = vmatpush.bf16.msra.mxu0 %v1718_v7  ;;  %v1774_v17 = vld [vmem:[%s2670_s2 + $0x60] sm:$0xff] }
   0x7   :  { %289 = vmatpush.bf16.msra.mxu1 %v1725_v8  ;;  %v1781_v18 = vld [vmem:[%s2670_s2 + $0xa0] sm:$0xff] }
   0x8   :  { %302 = vmatpush.bf16.msra.mxu2 %v1730_v9  ;;  %v1786_v19 = vld [vmem:[%s2669_s1 + $0x20] sm:$0xff] }
   0x9   :  { %459 = vmatpush.bf16.msra.mxu3 %v1736_v10 }
   0xa   :  { %1573 = vset.pattern.permute.xlu0 %v1657_v15  ;;  %277 = vmatpush.bf16.msra.mxu0 %v1743_v11 }
   0xb   :  { %498 = vperm.xlu0 %1573, %v1691_v0   ;;  %290 = vmatpush.bf16.msra.mxu1 %v1750_v12 }
   0xc   :  { %303 = vmatpush.bf16.msra.mxu2 %v1756_v13 }
   0xd   :  { %460 = vmatpush.bf16.msra.mxu3 %v1761_v14 }
   0xe   :  { %8 = vsyncpa [#allocation3], 0  ;;  %278 = vmatpush.bf16.msra.mxu0 %v1767_v16  ;;  %v1792_v20 = vld [vmem:[%s2670_s2 + $0x18] sm:$0xff]  ;;  %v1658_v22 = vmov 3   ;;  %v1817_v25 = vld [vmem:[%s2670_s2 + $0x10] sm:$0xff]  ;;  %v16_v53 = vlaneseq  ;;  %v1660_v3 = vmov 4  }
   0xf   :  { %291 = vmatpush.bf16.msra.mxu1 %v1774_v17  ;;  %v1798_v21 = vld [vmem:[%s2670_s2 + $0x58] sm:$0xff]  ;;  %1575 = vset.pattern.permute.xlu1 %v1658_v22  ;;  %v1823_v26 = vld [vmem:[%s2670_s2 + $0x50] sm:$0xff]  ;;  %v1841_v29 = vld [vmem:[%s2670_s2 + $0x8] sm:$0xff]  ;;  %v2672_v58 = vmov 1.0|1.0   ;;  %s1664_s25 = smov 32  }
  0x10   :  { %304 = vmatpush.bf16.msra.mxu2 %v1781_v18  ;;  %v1805_v23 = vld [vmem:[%s2670_s2 + $0x98] sm:$0xff]  ;;  %684 = vperm.xlu1 %1575, %v1691_v0   ;;  %v1830_v27 = vld [vmem:[%s2670_s2 + $0x90] sm:$0xff]  ;;  %v1847_v30 = vld [vmem:[%s2670_s2 + $0x48] sm:$0xff]  ;;  %v2001_v54 = vand.u32 127, %v16_v53  ;;  %v1661_v53 = vmov 5   ;;  %s1665_s26 = smov 64  }
  0x11   :  { %461 = vmatpush.bf16.msra.mxu3 %v1786_v19  ;;  %v1810_v24 = vld [vmem:[%s2669_s1 + $0x18] sm:$0xff]  ;;  %v1835_v28 = vld [vmem:[%s2669_s1 + $0x10] sm:$0xff]  ;;  %v1854_v31 = vld [vmem:[%s2670_s2 + $0x88] sm:$0xff]  ;;  %1576 = vset.pattern.permute.xlu2 %v1660_v3  ;;  %s1190_s19 = sshll.u32 %s2671_s3, 4  ;;  %s1191_s19 = int_to_ptr.hbm [resolvable:$true] %s1190_s19 }
  0x12   :  { %279 = vmatpush.bf16.msra.mxu0 %v1792_v20  ;;  %v1859_v32 = vld [vmem:[%s2669_s1 + $0x8] sm:$0xff]  ;;  %v1865_v33 = vld [vmem:[%s2670_s2] sm:$0xff]  ;;  %v1876_v35 = vld [vmem:[%s2669_s1 + $0x78] sm:$0xff]  ;;  %v2004_v55 = vadd.s32 128, %v2001_v54  ;;  %v2007_v56 = vadd.s32 256, %v2001_v54  ;;  %777 = vperm.xlu2 %1576, %v1691_v0  }
  0x13   :  { %292 = vmatpush.bf16.msra.mxu1 %v1798_v21  ;;  %v1871_v34 = vld [vmem:[%s2670_s2 + $0x40] sm:$0xff]  ;;  %v1893_v38 = vld [vmem:[%s2669_s1 + $0xb8] sm:$0xff]  ;;  %v1901_v39 = vld [vmem:[%s2669_s1 + $0x70] sm:$0xff] }
  0x14   :  { %305 = vmatpush.bf16.msra.mxu2 %v1805_v23  ;;  %v1883_v36 = vld [vmem:[%s2670_s2 + $0x80] sm:$0xff]  ;;  %v1910_v40 = vld [vmem:[%s2669_s1 + $0xb0] sm:$0xff]  ;;  %v1917_v41 = vld [vmem:[%s2669_s1 + $0x68] sm:$0xff] }
  0x15   :  { %462 = vmatpush.bf16.msra.mxu3 %v1810_v24  ;;  %v1888_v37 = vld [vmem:[%s2669_s1] sm:$0xff]  ;;  %v1924_v42 = vld [vmem:[%s2669_s1 + $0xa8] sm:$0xff]  ;;  %v1945_v45 = vld [vmem:[%s2669_s1 + $0x58] sm:$0xff] }
  0x16   :  { %280 = vmatpush.bf16.msra.mxu0 %v1817_v25  ;;  %v1931_v43 = vld [vmem:[%s2669_s1 + $0x60] sm:$0xff]  ;;  %v1952_v46 = vld [vmem:[%s2669_s1 + $0x98] sm:$0xff]  ;;  %v1959_v47 = vld [vmem:[%s2669_s1 + $0x50] sm:$0xff] }
  0x17   :  { %293 = vmatpush.bf16.msra.mxu1 %v1823_v26  ;;  %v1938_v44 = vld [vmem:[%s2669_s1 + $0xa0] sm:$0xff]  ;;  %v1966_v48 = vld [vmem:[%s2669_s1 + $0x90] sm:$0xff]  ;;  %v1973_v49 = vld [vmem:[%s2669_s1 + $0x48] sm:$0xff] }
  0x18   :  { %306 = vmatpush.bf16.msra.mxu2 %v1830_v27  ;;  %v1980_v50 = vld [vmem:[%s2669_s1 + $0x88] sm:$0xff]  ;;  %v1992_v51 = vld [vmem:[%s2669_s1 + $0x40] sm:$0xff] }
  0x19   :  { %463 = vmatpush.bf16.msra.mxu3 %v1835_v28  ;;  %v1997_v52 = vld [vmem:[%s2669_s1 + $0x80] sm:$0xff] }
  0x1a   :  { %281 = vmatpush.bf16.msra.mxu0 %v1841_v29  ;;  %1577 = vset.pattern.permute.xlu2 %v1661_v53 }
  0x1b   :  { %294 = vmatpush.bf16.msra.mxu1 %v1847_v30  ;;  %870 = vperm.xlu2 %1577, %v1691_v0  }
  0x1c   :  { %307 = vmatpush.bf16.msra.mxu2 %v1854_v31 }
  0x1d   :  { %464 = vmatpush.bf16.msra.mxu3 %v1859_v32 }
  0x1e   :  { %282 = vmatpush.bf16.msra.mxu0 %v1865_v33 }
  0x1f   :  { %295 = vmatpush.bf16.msra.mxu1 %v1871_v34 }
  0x20   :  { %308 = vmatpush.bf16.msra.mxu2 %v1883_v36 }
  0x21   :  { %465 = vmatpush.bf16.msra.mxu3 %v1888_v37 }
  0x22   :  { %471 = vmatpush.bf16.msrb.mxu0 %v1876_v35 }
  0x23   :  { %484 = vmatpush.bf16.msrb.mxu1 %v1893_v38 }
  0x24   :  { %512 = vmatpush.bf16.msrb.mxu2 %v1696_v1 }
  0x25   :  { %525 = vmatpush.bf16.msrb.mxu3 %v1701_v2 }
  0x26   :  { %472 = vmatpush.bf16.msrb.mxu0 %v1901_v39 }
  0x27   :  { %485 = vmatpush.bf16.msrb.mxu1 %v1910_v40 }
  0x28   :  { %513 = vmatpush.bf16.msrb.mxu2 %v1718_v7 }
  0x29   :  { %526 = vmatpush.bf16.msrb.mxu3 %v1725_v8 }
  0x2a   :  { %473 = vmatpush.bf16.msrb.mxu0 %v1917_v41 }
  0x2b   :  { %486 = vmatpush.bf16.msrb.mxu1 %v1924_v42 }
  0x2c   :  { %514 = vmatpush.bf16.msrb.mxu2 %v1743_v11 }
  0x2d   :  { %527 = vmatpush.bf16.msrb.mxu3 %v1750_v12 }
  0x2e   :  { %474 = vmatpush.bf16.msrb.mxu0 %v1931_v43 }
  0x2f   :  { %487 = vmatpush.bf16.msrb.mxu1 %v1938_v44 }
  0x30   :  { %515 = vmatpush.bf16.msrb.mxu2 %v1767_v16 }
  0x31   :  { %528 = vmatpush.bf16.msrb.mxu3 %v1774_v17 }
  0x32   :  { %475 = vmatpush.bf16.msrb.mxu0 %v1945_v45 }
  0x33   :  { %488 = vmatpush.bf16.msrb.mxu1 %v1952_v46 }
  0x34   :  { %516 = vmatpush.bf16.msrb.mxu2 %v1792_v20 }
  0x35   :  { %529 = vmatpush.bf16.msrb.mxu3 %v1798_v21 }
  0x36   :  { %476 = vmatpush.bf16.msrb.mxu0 %v1959_v47 }
  0x37   :  { %489 = vmatpush.bf16.msrb.mxu1 %v1966_v48 }
  0x38   :  { %517 = vmatpush.bf16.msrb.mxu2 %v1817_v25 }
  0x39   :  { %530 = vmatpush.bf16.msrb.mxu3 %v1823_v26 }
  0x3a   :  { %477 = vmatpush.bf16.msrb.mxu0 %v1973_v49 }
  0x3b   :  { %490 = vmatpush.bf16.msrb.mxu1 %v1980_v50 }
  0x3c   :  { %518 = vmatpush.bf16.msrb.mxu2 %v1841_v29 }
  0x3d   :  { %531 = vmatpush.bf16.msrb.mxu3 %v1847_v30 }
  0x3e   :  { %478 = vmatpush.bf16.msrb.mxu0 %v1992_v51 }
  0x3f   :  { %491 = vmatpush.bf16.msrb.mxu1 %v1997_v52 }
  0x40   :  { %519 = vmatpush.bf16.msrb.mxu2 %v1865_v33 }
  0x41   :  { %532 = vmatpush.bf16.msrb.mxu3 %v1871_v34 }
  0x74   :  { %v22_v57 = vpop.permute.xlu0 %21 }
  0x75   :  { %vm23_vm0 = vcmp.eq.s32.totalorder %v2001_v54, %v22_v57  ;;  %vm24_vm1 = vcmp.eq.s32.totalorder %v2004_v55, %v22_v57  ;;  %vm25_vm2 = vcmp.eq.s32.totalorder %v2007_v56, %v22_v57  ;;  %v592_v6 = vpop.permute.xlu1 %591 }
  0x76   :  { %vm1298_vm3 = vmpackc.low %vm23_vm0, %vm23_vm0  ;;  %vm593_vm12 = vcmp.eq.s32.totalorder %v2001_v54, %v592_v6  ;;  %vm594_vm13 = vcmp.eq.s32.totalorder %v2004_v55, %v592_v6  ;;  %vm595_vm14 = vcmp.eq.s32.totalorder %v2007_v56, %v592_v6 }
  0x77   :  { %1299 = vmatmul.msk.bf16.vlgmr.msra.gmra.mxu0 %vm1298_vm3, %v2672_v58  ;;  %vm2013_vm4 = vmpackc.low %vm24_vm1, %vm24_vm1  ;;  %1401 = vmatmul.msk.bf16.vlgmr.msra.gmra.mxu3 %vm1298_vm3, %v2672_v58 }
  0x78   :  { %1301 = vmatmul.msk.bf16.vlgmr.msra.gmra.mxu1 %vm2013_vm4, %v2672_v58  ;;  %vm2021_vm5 = vmpackc.low %vm25_vm2, %vm25_vm2  ;;  %538 = vmatpush.bf16.msra.mxu0 %v1706_v4 }
  0x79   :  { %1303 = vmatmul.msk.bf16.vlgmr.msra.gmra.mxu2 %vm2021_vm5, %v2672_v58  ;;  %551 = vmatpush.bf16.msra.mxu1 %v1711_v5  ;;  %vm1424_vm15 = vmpackc.low %vm593_vm12, %vm593_vm12 }
  0x7a   :  { %564 = vmatpush.bf16.msra.mxu2 %v1876_v35  ;;  %577 = vmatpush.bf16.msra.mxu3 %v1893_v38  ;;  %vm2126_vm0 = vmpackc.low %vm594_vm13, %vm594_vm13 }
  0x7b   :  { %vm2132_vm1 = vmpackc.low %vm595_vm14, %vm595_vm14 }
  0x7c   :  { %539 = vmatpush.bf16.msra.mxu0 %v1730_v9 }
  0x7d   :  { %552 = vmatpush.bf16.msra.mxu1 %v1736_v10  ;;  %v499_v61 = vpop.permute.xlu0 %498 }
  0x7e   :  { %565 = vmatpush.bf16.msra.mxu2 %v1901_v39  ;;  %578 = vmatpush.bf16.msra.mxu3 %v1910_v40  ;;  %vm501_vm6 = vcmp.eq.s32.totalorder %v2004_v55, %v499_v61  ;;  %vm500_vm7 = vcmp.eq.s32.totalorder %v2001_v54, %v499_v61  ;;  %vm502_vm10 = vcmp.eq.s32.totalorder %v2007_v56, %v499_v61  ;;  %v1662_v61 = vmov 6  }
  0x7f   :  { %vm2043_vm8 = vmpackc.low %vm501_vm6, %vm501_vm6  ;;  %1578 = vset.pattern.permute.xlu1 %v1662_v61 }
  0x80   :  { %540 = vmatpush.bf16.msra.mxu0 %v1756_v13  ;;  %vm2050_vm9 = vmpackc.low %vm500_vm7, %vm500_vm7  ;;  %963 = vperm.xlu1 %1578, %v1691_v0  }
  0x81   :  { %553 = vmatpush.bf16.msra.mxu1 %v1761_v14  ;;  %vm1413_vm11 = vmpackc.low %vm502_vm10, %vm502_vm10 }
  0x82   :  { %566 = vmatpush.bf16.msra.mxu2 %v1917_v41  ;;  %579 = vmatpush.bf16.msra.mxu3 %v1924_v42  ;;  %v685_v57 = vpop.permute.xlu1 %684 }
  0x83   :  { %vm686_vm2 = vcmp.eq.s32.totalorder %v2001_v54, %v685_v57  ;;  %vm687_vm3 = vcmp.eq.s32.totalorder %v2004_v55, %v685_v57  ;;  %vm688_vm6 = vcmp.eq.s32.totalorder %v2007_v56, %v685_v57 }
  0x84   :  { %541 = vmatpush.bf16.msra.mxu0 %v1781_v18  ;;  %vm1443_vm7 = vmpackc.low %vm688_vm6, %vm688_vm6 }
  0x85   :  { %554 = vmatpush.bf16.msra.mxu1 %v1786_v19 }
  0x86   :  { %567 = vmatpush.bf16.msra.mxu2 %v1931_v43  ;;  %580 = vmatpush.bf16.msra.mxu3 %v1938_v44 }
  0x87   :  { %1403 = vmatmul.msk.bf16.vlgmr.msrb.gmra.mxu0 %vm2013_vm4, %v2672_v58  ;;  %1412 = vmatmul.msk.bf16.vlgmr.msrb.gmra.mxu3 %vm2043_vm8, %v2672_v58  ;;  %vm2179_vm4 = vmpackc.low %vm686_vm2, %vm686_vm2 }
  0x88   :  { %1405 = vmatmul.msk.bf16.vlgmr.msrb.gmra.mxu1 %vm2021_vm5, %v2672_v58  ;;  %542 = vmatpush.bf16.msra.mxu0 %v1805_v23  ;;  %vm2185_vm5 = vmpackc.low %vm687_vm3, %vm687_vm3 }
  0x89   :  { %1410 = vmatmul.msk.bf16.vlgmr.msrb.gmra.mxu2 %vm2050_vm9, %v2672_v58  ;;  %555 = vmatpush.bf16.msra.mxu1 %v1810_v24 }
  0x8a   :  { %568 = vmatpush.bf16.msra.mxu2 %v1945_v45  ;;  %581 = vmatpush.bf16.msra.mxu3 %v1952_v46 }
  0x8c   :  { %543 = vmatpush.bf16.msra.mxu0 %v1830_v27 }
  0x8d   :  { %556 = vmatpush.bf16.msra.mxu1 %v1835_v28 }
  0x8e   :  { %569 = vmatpush.bf16.msra.mxu2 %v1959_v47  ;;  %582 = vmatpush.bf16.msra.mxu3 %v1966_v48 }
  0x90   :  { %544 = vmatpush.bf16.msra.mxu0 %v1854_v31 }
  0x91   :  { %557 = vmatpush.bf16.msra.mxu1 %v1859_v32 }
  0x92   :  { %570 = vmatpush.bf16.msra.mxu2 %v1973_v49  ;;  %583 = vmatpush.bf16.msra.mxu3 %v1980_v50 }
  0x94   :  { %545 = vmatpush.bf16.msra.mxu0 %v1883_v36 }
  0x95   :  { %558 = vmatpush.bf16.msra.mxu1 %v1888_v37 }
  0x96   :  { %571 = vmatpush.bf16.msra.mxu2 %v1992_v51  ;;  %584 = vmatpush.bf16.msra.mxu3 %v1997_v52 }
  0x97   :  { %1414 = vmatmul.msk.bf16.vlgmr.msra.gmra.mxu0 %vm1413_vm11, %v2672_v58 }
  0x98   :  { %605 = vmatpush.bf16.msrb.mxu0 %v1696_v1  ;;  %1416 = vmatmul.msk.bf16.vlgmr.msra.gmra.mxu1 %vm2050_vm9, %v2672_v58 }
  0x99   :  { %618 = vmatpush.bf16.msrb.mxu1 %v1701_v2  ;;  %1418 = vmatmul.msk.bf16.vlgmr.msra.gmra.mxu2 %vm2043_vm8, %v2672_v58 }
  0x9a   :  { %631 = vmatpush.bf16.msrb.mxu2 %v1706_v4  ;;  %644 = vmatpush.bf16.msrb.mxu3 %v1711_v5 }
  0x9b   :  { %1420 = vmatmul.msk.bf16.vlgmr.msra.gmra.mxu3 %vm1413_vm11, %v2672_v58 }
  0x9c   :  { %606 = vmatpush.bf16.msrb.mxu0 %v1718_v7 }
  0x9d   :  { %619 = vmatpush.bf16.msrb.mxu1 %v1725_v8 }
  0x9e   :  { %632 = vmatpush.bf16.msrb.mxu2 %v1730_v9  ;;  %645 = vmatpush.bf16.msrb.mxu3 %v1736_v10 }
  0xa0   :  { %607 = vmatpush.bf16.msrb.mxu0 %v1743_v11 }
  0xa1   :  { %620 = vmatpush.bf16.msrb.mxu1 %v1750_v12 }
  0xa2   :  { %633 = vmatpush.bf16.msrb.mxu2 %v1756_v13  ;;  %646 = vmatpush.bf16.msrb.mxu3 %v1761_v14 }
  0xa4   :  { %608 = vmatpush.bf16.msrb.mxu0 %v1767_v16 }
  0xa5   :  { %621 = vmatpush.bf16.msrb.mxu1 %v1774_v17 }
  0xa6   :  { %634 = vmatpush.bf16.msrb.mxu2 %v1781_v18  ;;  %647 = vmatpush.bf16.msrb.mxu3 %v1786_v19 }
  0xa8   :  { %609 = vmatpush.bf16.msrb.mxu0 %v1792_v20 }
  0xa9   :  { %622 = vmatpush.bf16.msrb.mxu1 %v1798_v21 }
  0xaa   :  { %635 = vmatpush.bf16.msrb.mxu2 %v1805_v23  ;;  %648 = vmatpush.bf16.msrb.mxu3 %v1810_v24 }
  0xac   :  { %610 = vmatpush.bf16.msrb.mxu0 %v1817_v25 }
  0xad   :  { %623 = vmatpush.bf16.msrb.mxu1 %v1823_v26 }
  0xae   :  { %636 = vmatpush.bf16.msrb.mxu2 %v1830_v27  ;;  %649 = vmatpush.bf16.msrb.mxu3 %v1835_v28 }
  0xb0   :  { %611 = vmatpush.bf16.msrb.mxu0 %v1841_v29 }
  0xb1   :  { %624 = vmatpush.bf16.msrb.mxu1 %v1847_v30 }
  0xb2   :  { %637 = vmatpush.bf16.msrb.mxu2 %v1854_v31  ;;  %650 = vmatpush.bf16.msrb.mxu3 %v1859_v32 }
  0xb4   :  { %612 = vmatpush.bf16.msrb.mxu0 %v1865_v33 }
  0xb5   :  { %625 = vmatpush.bf16.msrb.mxu1 %v1871_v34 }
  0xb6   :  { %638 = vmatpush.bf16.msrb.mxu2 %v1883_v36  ;;  %651 = vmatpush.bf16.msrb.mxu3 %v1888_v37 }
  0xb7   :  { %1425 = vmatmul.msk.bf16.vlgmr.msrb.gmra.mxu0 %vm1424_vm15, %v2672_v58 }
  0xb8   :  { %657 = vmatpush.bf16.msra.mxu0 %v1876_v35  ;;  %1427 = vmatmul.msk.bf16.vlgmr.msrb.gmra.mxu1 %vm2126_vm0, %v2672_v58 }
  0xb9   :  { %670 = vmatpush.bf16.msra.mxu1 %v1893_v38  ;;  %1429 = vmatmul.msk.bf16.vlgmr.msrb.gmra.mxu2 %vm2132_vm1, %v2672_v58 }
  0xba   :  { %698 = vmatpush.bf16.msra.mxu2 %v1696_v1  ;;  %711 = vmatpush.bf16.msra.mxu3 %v1701_v2 }
  0xbb   :  { %1431 = vmatmul.msk.bf16.vlgmr.msrb.gmra.mxu3 %vm1424_vm15, %v2672_v58 }
  0xbc   :  { %658 = vmatpush.bf16.msra.mxu0 %v1901_v39 }
  0xbd   :  { %671 = vmatpush.bf16.msra.mxu1 %v1910_v40 }
  0xbe   :  { %699 = vmatpush.bf16.msra.mxu2 %v1718_v7  ;;  %712 = vmatpush.bf16.msra.mxu3 %v1725_v8 }
  0xc0   :  { %659 = vmatpush.bf16.msra.mxu0 %v1917_v41 }
  0xc1   :  { %672 = vmatpush.bf16.msra.mxu1 %v1924_v42 }
  0xc2   :  { %700 = vmatpush.bf16.msra.mxu2 %v1743_v11  ;;  %713 = vmatpush.bf16.msra.mxu3 %v1750_v12 }
  0xc4   :  { %660 = vmatpush.bf16.msra.mxu0 %v1931_v43 }
  0xc5   :  { %673 = vmatpush.bf16.msra.mxu1 %v1938_v44 }
  0xc6   :  { %701 = vmatpush.bf16.msra.mxu2 %v1767_v16  ;;  %714 = vmatpush.bf16.msra.mxu3 %v1774_v17 }
  0xc8   :  { %661 = vmatpush.bf16.msra.mxu0 %v1945_v45 }
  0xc9   :  { %674 = vmatpush.bf16.msra.mxu1 %v1952_v46 }
  0xca   :  { %702 = vmatpush.bf16.msra.mxu2 %v1792_v20  ;;  %715 = vmatpush.bf16.msra.mxu3 %v1798_v21 }
  0xcc   :  { %662 = vmatpush.bf16.msra.mxu0 %v1959_v47 }
  0xcd   :  { %675 = vmatpush.bf16.msra.mxu1 %v1966_v48 }
  0xce   :  { %703 = vmatpush.bf16.msra.mxu2 %v1817_v25  ;;  %716 = vmatpush.bf16.msra.mxu3 %v1823_v26 }
  0xd0   :  { %663 = vmatpush.bf16.msra.mxu0 %v1973_v49 }
  0xd1   :  { %676 = vmatpush.bf16.msra.mxu1 %v1980_v50 }
  0xd2   :  { %704 = vmatpush.bf16.msra.mxu2 %v1841_v29  ;;  %717 = vmatpush.bf16.msra.mxu3 %v1847_v30 }
  0xd4   :  { %664 = vmatpush.bf16.msra.mxu0 %v1992_v51 }
  0xd5   :  { %677 = vmatpush.bf16.msra.mxu1 %v1997_v52 }
  0xd6   :  { %705 = vmatpush.bf16.msra.mxu2 %v1865_v33  ;;  %718 = vmatpush.bf16.msra.mxu3 %v1871_v34 }
  0xd7   :  { %1433 = vmatmul.msk.bf16.vlgmr.msra.gmra.mxu0 %vm2126_vm0, %v2672_v58 }
  0xd8   :  { %724 = vmatpush.bf16.msrb.mxu0 %v1706_v4  ;;  %1435 = vmatmul.msk.bf16.vlgmr.msra.gmra.mxu1 %vm2132_vm1, %v2672_v58 }
  0xd9   :  { %737 = vmatpush.bf16.msrb.mxu1 %v1711_v5  ;;  %1440 = vmatmul.msk.bf16.vlgmr.msra.gmra.mxu2 %vm2179_vm4, %v2672_v58 }
  0xda   :  { %750 = vmatpush.bf16.msrb.mxu2 %v1876_v35  ;;  %763 = vmatpush.bf16.msrb.mxu3 %v1893_v38 }
  0xdb   :  { %1442 = vmatmul.msk.bf16.vlgmr.msra.gmra.mxu3 %vm2185_vm5, %v2672_v58 }
  0xdc   :  { %725 = vmatpush.bf16.msrb.mxu0 %v1730_v9 }
  0xdd   :  { %738 = vmatpush.bf16.msrb.mxu1 %v1736_v10 }
  0xde   :  { %751 = vmatpush.bf16.msrb.mxu2 %v1901_v39  ;;  %764 = vmatpush.bf16.msrb.mxu3 %v1910_v40 }
  0xe0   :  { %726 = vmatpush.bf16.msrb.mxu0 %v1756_v13 }
  0xe1   :  { %739 = vmatpush.bf16.msrb.mxu1 %v1761_v14 }
  0xe2   :  { %752 = vmatpush.bf16.msrb.mxu2 %v1917_v41  ;;  %765 = vmatpush.bf16.msrb.mxu3 %v1924_v42 }
  0xe4   :  { %727 = vmatpush.bf16.msrb.mxu0 %v1781_v18 }
  0xe5   :  { %740 = vmatpush.bf16.msrb.mxu1 %v1786_v19 }
  0xe6   :  { %753 = vmatpush.bf16.msrb.mxu2 %v1931_v43  ;;  %766 = vmatpush.bf16.msrb.mxu3 %v1938_v44 }
  0xe8   :  { %728 = vmatpush.bf16.msrb.mxu0 %v1805_v23 }
  0xe9   :  { %741 = vmatpush.bf16.msrb.mxu1 %v1810_v24 }
  0xea   :  { %754 = vmatpush.bf16.msrb.mxu2 %v1945_v45  ;;  %767 = vmatpush.bf16.msrb.mxu3 %v1952_v46 }
  0xec   :  { %729 = vmatpush.bf16.msrb.mxu0 %v1830_v27 }
  0xed   :  { %742 = vmatpush.bf16.msrb.mxu1 %v1835_v28 }
  0xee   :  { %755 = vmatpush.bf16.msrb.mxu2 %v1959_v47  ;;  %768 = vmatpush.bf16.msrb.mxu3 %v1966_v48 }
  0xf0   :  { %730 = vmatpush.bf16.msrb.mxu0 %v1854_v31 }
  0xf1   :  { %743 = vmatpush.bf16.msrb.mxu1 %v1859_v32 }
  0xf2   :  { %756 = vmatpush.bf16.msrb.mxu2 %v1973_v49  ;;  %769 = vmatpush.bf16.msrb.mxu3 %v1980_v50 }
  0xf4   :  { %731 = vmatpush.bf16.msrb.mxu0 %v1883_v36  ;;  %v284_v62 = vpop.f32.mrf.mxu0 }
  0xf5   :  { %744 = vmatpush.bf16.msrb.mxu1 %v1888_v37  ;;  %v297_v63 = vpop.f32.mrf.mxu1 }
  0xf6   :  { %757 = vmatpush.bf16.msrb.mxu2 %v1992_v51  ;;  %770 = vmatpush.bf16.msrb.mxu3 %v1997_v52  ;;  %v298_v3 = vadd.f32 %v297_v63, %v284_v62 }
  0xf7   :  { %1444 = vmatmul.msk.bf16.vlgmr.msrb.gmra.mxu0 %vm1443_vm7, %v2672_v58 }
  0xf8   :  { %791 = vmatpush.bf16.msra.mxu0 %v1696_v1  ;;  %1446 = vmatmul.msk.bf16.vlgmr.msrb.gmra.mxu1 %vm2179_vm4, %v2672_v58 }
  0xf9   :  { %804 = vmatpush.bf16.msra.mxu1 %v1701_v2  ;;  %1448 = vmatmul.msk.bf16.vlgmr.msrb.gmra.mxu2 %vm2185_vm5, %v2672_v58 }
  0xfa   :  { %817 = vmatpush.bf16.msra.mxu2 %v1706_v4  ;;  %830 = vmatpush.bf16.msra.mxu3 %v1711_v5  ;;  %v467_v6 = vpop.f32.mrf.mxu3 }
  0xfb   :  { %1450 = vmatmul.msk.bf16.vlgmr.msrb.gmra.mxu3 %vm1443_vm7, %v2672_v58 }
  0xfc   :  { %792 = vmatpush.bf16.msra.mxu0 %v1718_v7  ;;  %v310_v15 = vpop.f32.mrf.mxu2  ;;  %v286_v22 = vpop.f32.mrf.mxu0 }
  0xfd   :  { %805 = vmatpush.bf16.msra.mxu1 %v1725_v8  ;;  %v311_v53 = vadd.f32 %v310_v15, %v298_v3  ;;  %v299_v57 = vpop.f32.mrf.mxu1 }
  0xfe   :  { %818 = vmatpush.bf16.msra.mxu2 %v1730_v9  ;;  %831 = vmatpush.bf16.msra.mxu3 %v1736_v10 }
  0xff   :  { %v468_v59 = vadd.f32 %v467_v6, %v311_v53  ;;  %v778_v6 = vpop.permute.xlu2 %777 }
 0x100   :  { %793 = vmatpush.bf16.msra.mxu0 %v1743_v11  ;;  %vm779_vm8 = vcmp.eq.s32.totalorder %v2001_v54, %v778_v6  ;;  %vm780_vm9 = vcmp.eq.s32.totalorder %v2004_v55, %v778_v6  ;;  %vm781_vm10 = vcmp.eq.s32.totalorder %v2007_v56, %v778_v6 }
 0x101   :  { %806 = vmatpush.bf16.msra.mxu1 %v1750_v12  ;;  %vm2274_vm11 = vmpackc.low %vm779_vm8, %vm779_vm8 }
 0x102   :  { %819 = vmatpush.bf16.msra.mxu2 %v1756_v13  ;;  %832 = vmatpush.bf16.msra.mxu3 %v1761_v14  ;;  %v469_v60 = vpop.f32.mrf.mxu3  ;;  %vm2280_vm12 = vmpackc.low %vm780_vm9, %vm780_vm9 }
 0x103   :  { %vm2286_vm13 = vmpackc.low %vm781_vm10, %vm781_vm10 }
 0x104   :  { %794 = vmatpush.bf16.msra.mxu0 %v1767_v16  ;;  %v312_v61 = vpop.f32.mrf.mxu2  ;;  %v480_v62 = vpop.f32.mrf.mxu0 }
 0x105   :  { %807 = vmatpush.bf16.msra.mxu1 %v1774_v17  ;;  %v481_v63 = vadd.f32 %v480_v62, %v468_v59  ;;  %v493_v3 = vpop.f32.mrf.mxu1 }
 0x106   :  { %820 = vmatpush.bf16.msra.mxu2 %v1781_v18  ;;  %833 = vmatpush.bf16.msra.mxu3 %v1786_v19 }
 0x107   :  { %v2264_v15 = vadd.f32 %v493_v3, %v481_v63 }
 0x108   :  { %795 = vmatpush.bf16.msra.mxu0 %v1792_v20 }
 0x109   :  { %808 = vmatpush.bf16.msra.mxu1 %v1798_v21 }
 0x10a   :  { %821 = vmatpush.bf16.msra.mxu2 %v1805_v23  ;;  %834 = vmatpush.bf16.msra.mxu3 %v1810_v24  ;;  %v534_v22 = vpop.f32.mrf.mxu3 }
 0x10c   :  { %796 = vmatpush.bf16.msra.mxu0 %v1817_v25  ;;  %v521_v53 = vpop.f32.mrf.mxu2  ;;  %v482_v57 = vpop.f32.mrf.mxu0 }
 0x10d   :  { %809 = vmatpush.bf16.msra.mxu1 %v1823_v26  ;;  %v495_v60 = vpop.f32.mrf.mxu1  ;;  %v535_v3 = vadd.f32 %v534_v22, %v521_v53  ;;  %v1663_v57 = vmov 7  }
 0x10e   :  { %822 = vmatpush.bf16.msra.mxu2 %v1830_v27  ;;  %835 = vmatpush.bf16.msra.mxu3 %v1835_v28 }
 0x10f   :  { %1579 = vset.pattern.permute.xlu2 %v1663_v57  ;;  %1580 = vset.pattern.permute.xlu0 %v1663_v57 }
 0x110   :  { %797 = vmatpush.bf16.msra.mxu0 %v1841_v29  ;;  %1056 = vperm.xlu2 %1579, %v1691_v0  }
 0x111   :  { %810 = vmatpush.bf16.msra.mxu1 %v1847_v30 }
 0x112   :  { %823 = vmatpush.bf16.msra.mxu2 %v1854_v31  ;;  %836 = vmatpush.bf16.msra.mxu3 %v1859_v32  ;;  %v536_v63 = vpop.f32.mrf.mxu3 }
 0x114   :  { %798 = vmatpush.bf16.msra.mxu0 %v1865_v33  ;;  %v523_v6 = vpop.f32.mrf.mxu2  ;;  %v547_v60 = vpop.f32.mrf.mxu0 }
 0x115   :  { %811 = vmatpush.bf16.msra.mxu1 %v1871_v34  ;;  %v560_v63 = vpop.f32.mrf.mxu1  ;;  %v548_v22 = vadd.f32 %v547_v60, %v535_v3 }
 0x116   :  { %824 = vmatpush.bf16.msra.mxu2 %v1883_v36  ;;  %837 = vmatpush.bf16.msra.mxu3 %v1888_v37 }
 0x117   :  { %1455 = vmatmul.msk.bf16.vlgmr.msra.gmra.mxu0 %vm2274_vm11, %v2672_v58  ;;  %v561_v53 = vadd.f32 %v560_v63, %v548_v22  ;;  %v871_v63 = vpop.permute.xlu2 %870  ;;  %v1601_v22 = vld [vmem:[%s2670_s2 + $0xb0] sm:$0xff] }
 0x118   :  { %843 = vmatpush.bf16.msrb.mxu0 %v1876_v35  ;;  %1457 = vmatmul.msk.bf16.vlgmr.msra.gmra.mxu1 %vm2280_vm12, %v2672_v58  ;;  %vm872_vm14 = vcmp.eq.s32.totalorder %v2001_v54, %v871_v63  ;;  %vm873_vm15 = vcmp.eq.s32.totalorder %v2004_v55, %v871_v63  ;;  %vm874_vm2 = vcmp.eq.s32.totalorder %v2007_v56, %v871_v63 }
 0x119   :  { %856 = vmatpush.bf16.msrb.mxu1 %v1893_v38  ;;  %1459 = vmatmul.msk.bf16.vlgmr.msra.gmra.mxu2 %vm2286_vm13, %v2672_v58  ;;  %vm2338_vm0 = vmpackc.low %vm872_vm14, %vm872_vm14 }
 0x11a   :  { %884 = vmatpush.bf16.msrb.mxu2 %v1696_v1  ;;  %897 = vmatpush.bf16.msrb.mxu3 %v1701_v2  ;;  %vm2344_vm1 = vmpackc.low %vm873_vm15, %vm873_vm15 }
 0x11b   :  { %1461 = vmatmul.msk.bf16.vlgmr.msra.gmra.mxu3 %vm2274_vm11, %v2672_v58  ;;  %vm1473_vm3 = vmpackc.low %vm874_vm2, %vm874_vm2  ;;  %vm1176_vm2 = vcmask 785408  }
 0x11c   :  { %844 = vmatpush.bf16.msrb.mxu0 %v1901_v39  ;;  %v573_v0 = vpop.f32.mrf.mxu2  ;;  %v549_v57 = vpop.f32.mrf.mxu0 }
 0x11d   :  { %857 = vmatpush.bf16.msrb.mxu1 %v1910_v40  ;;  %v574_v59 = vadd.f32 %v573_v0, %v561_v53  ;;  %v562_v58 = vpop.f32.mrf.mxu1  ;;  %v2700_v0 = vmov 1.0|1.0   ;;  %v1602_v53 = vld [vmem:[%s2669_s1 + $0x30] sm:$0xff] }
 0x11e   :  { %885 = vmatpush.bf16.msrb.mxu2 %v1718_v7  ;;  %898 = vmatpush.bf16.msrb.mxu3 %v1725_v8  ;;  %v586_v6 = vpop.f32.mrf.mxu3 }
 0x11f   :  { %v587_v3 = vadd.f32 %v586_v6, %v574_v59 }
 0x120   :  { %845 = vmatpush.bf16.msrb.mxu0 %v1917_v41 }
 0x121   :  { %858 = vmatpush.bf16.msrb.mxu1 %v1924_v42  ;;  %1149 = vrot.lane.b32.xlu0 %v587_v3, %s1664_s25 }
 0x122   :  { %886 = vmatpush.bf16.msrb.mxu2 %v1743_v11  ;;  %899 = vmatpush.bf16.msrb.mxu3 %v1750_v12 }
 0x124   :  { %846 = vmatpush.bf16.msrb.mxu0 %v1931_v43  ;;  %v575_v60 = vpop.f32.mrf.mxu2 }
 0x125   :  { %859 = vmatpush.bf16.msrb.mxu1 %v1938_v44 }
 0x126   :  { %887 = vmatpush.bf16.msrb.mxu2 %v1767_v16  ;;  %900 = vmatpush.bf16.msrb.mxu3 %v1774_v17  ;;  %v588_v58 = vpop.f32.mrf.mxu3 }
 0x128   :  { %847 = vmatpush.bf16.msrb.mxu0 %v1945_v45 }
 0x129   :  { %860 = vmatpush.bf16.msrb.mxu1 %v1952_v46 }
 0x12a   :  { %888 = vmatpush.bf16.msrb.mxu2 %v1792_v20  ;;  %901 = vmatpush.bf16.msrb.mxu3 %v1798_v21 }
 0x12c   :  { %848 = vmatpush.bf16.msrb.mxu0 %v1959_v47 }
 0x12d   :  { %861 = vmatpush.bf16.msrb.mxu1 %v1966_v48 }
 0x12e   :  { %889 = vmatpush.bf16.msrb.mxu2 %v1817_v25  ;;  %902 = vmatpush.bf16.msrb.mxu3 %v1823_v26 }
 0x130   :  { %849 = vmatpush.bf16.msrb.mxu0 %v1973_v49 }
 0x131   :  { %862 = vmatpush.bf16.msrb.mxu1 %v1980_v50 }
 0x132   :  { %890 = vmatpush.bf16.msrb.mxu2 %v1841_v29  ;;  %903 = vmatpush.bf16.msrb.mxu3 %v1847_v30 }
 0x134   :  { %850 = vmatpush.bf16.msrb.mxu0 %v1992_v51  ;;  %v614_v61 = vpop.f32.mrf.mxu0 }
 0x135   :  { %863 = vmatpush.bf16.msrb.mxu1 %v1997_v52  ;;  %v627_v62 = vpop.f32.mrf.mxu1 }
 0x136   :  { %891 = vmatpush.bf16.msrb.mxu2 %v1865_v33  ;;  %904 = vmatpush.bf16.msrb.mxu3 %v1871_v34 }
 0x137   :  { %1463 = vmatmul.msk.bf16.vlgmr.msrb.gmra.mxu0 %vm2280_vm12, %v2700_v0 }
 0x138   :  { %910 = vmatpush.bf16.msra.mxu0 %v1706_v4  ;;  %1465 = vmatmul.msk.bf16.vlgmr.msrb.gmra.mxu1 %vm2286_vm13, %v2700_v0 }
 0x139   :  { %923 = vmatpush.bf16.msra.mxu1 %v1711_v5  ;;  %1470 = vmatmul.msk.bf16.vlgmr.msrb.gmra.mxu2 %vm2338_vm0, %v2700_v0 }
 0x13a   :  { %936 = vmatpush.bf16.msra.mxu2 %v1876_v35  ;;  %949 = vmatpush.bf16.msra.mxu3 %v1893_v38 }
 0x13b   :  { %1472 = vmatmul.msk.bf16.vlgmr.msrb.gmra.mxu3 %vm2344_vm1, %v2700_v0 }
 0x13c   :  { %911 = vmatpush.bf16.msra.mxu0 %v1730_v9  ;;  %v640_v59 = vpop.f32.mrf.mxu2  ;;  %v616_v6 = vpop.f32.mrf.mxu0 }
 0x13d   :  { %924 = vmatpush.bf16.msra.mxu1 %v1736_v10  ;;  %v629_v3 = vpop.f32.mrf.mxu1  ;;  %v628_v6 = vadd.f32 %v627_v62, %v614_v61  ;;  %v1603_v61 = vld [vmem:[%s2669_s1 + $0x70] sm:$0xff] }
 0x13e   :  { %937 = vmatpush.bf16.msra.mxu2 %v1901_v39  ;;  %950 = vmatpush.bf16.msra.mxu3 %v1910_v40  ;;  %v653_v57 = vpop.f32.mrf.mxu3  ;;  %v1604_v62 = vld [vmem:[%s2669_s1 + $0xb0] sm:$0xff] }
 0x13f   :  { %v641_v3 = vadd.f32 %v640_v59, %v628_v6  ;;  %v1607_v6 = vld [vmem:[%s2669_s1 + $0x68] sm:$0xff] }
 0x140   :  { %912 = vmatpush.bf16.msra.mxu0 %v1756_v13 }
 0x141   :  { %925 = vmatpush.bf16.msra.mxu1 %v1761_v14 }
 0x142   :  { %938 = vmatpush.bf16.msra.mxu2 %v1917_v41  ;;  %951 = vmatpush.bf16.msra.mxu3 %v1924_v42 }
 0x144   :  { %913 = vmatpush.bf16.msra.mxu0 %v1781_v18  ;;  %v642_v60 = vpop.f32.mrf.mxu2 }
 0x145   :  { %926 = vmatpush.bf16.msra.mxu1 %v1786_v19 }
 0x146   :  { %939 = vmatpush.bf16.msra.mxu2 %v1931_v43  ;;  %952 = vmatpush.bf16.msra.mxu3 %v1938_v44  ;;  %v655_v58 = vpop.f32.mrf.mxu3 }
 0x147   :  { %v1606_v58 = vld [vmem:[%s2669_s1 + $0x28] sm:$0xff] }
 0x148   :  { %914 = vmatpush.bf16.msra.mxu0 %v1805_v23 }
 0x149   :  { %927 = vmatpush.bf16.msra.mxu1 %v1810_v24 }
 0x14a   :  { %940 = vmatpush.bf16.msra.mxu2 %v1945_v45  ;;  %953 = vmatpush.bf16.msra.mxu3 %v1952_v46 }
 0x14c   :  { %915 = vmatpush.bf16.msra.mxu0 %v1830_v27 }
 0x14d   :  { %928 = vmatpush.bf16.msra.mxu1 %v1835_v28 }
 0x14e   :  { %941 = vmatpush.bf16.msra.mxu2 %v1959_v47  ;;  %954 = vmatpush.bf16.msra.mxu3 %v1966_v48 }
 0x150   :  { %916 = vmatpush.bf16.msra.mxu0 %v1854_v31 }
 0x151   :  { %929 = vmatpush.bf16.msra.mxu1 %v1859_v32 }
 0x152   :  { %942 = vmatpush.bf16.msra.mxu2 %v1973_v49  ;;  %955 = vmatpush.bf16.msra.mxu3 %v1980_v50 }
 0x154   :  { %917 = vmatpush.bf16.msra.mxu0 %v1883_v36 }
 0x155   :  { %930 = vmatpush.bf16.msra.mxu1 %v1888_v37 }
 0x156   :  { %943 = vmatpush.bf16.msra.mxu2 %v1992_v51  ;;  %956 = vmatpush.bf16.msra.mxu3 %v1997_v52 }
 0x157   :  { %1474 = vmatmul.msk.bf16.vlgmr.msra.gmra.mxu0 %vm1473_vm3, %v2700_v0 }
 0x158   :  { %977 = vmatpush.bf16.msrb.mxu0 %v1696_v1  ;;  %1476 = vmatmul.msk.bf16.vlgmr.msra.gmra.mxu1 %vm2338_vm0, %v2700_v0  ;;  %v654_v1 = vadd.f32 %v653_v57, %v641_v3  ;;  %v1605_v57 = vld [vmem:[%s2670_s2 + $0xa8] sm:$0xff]  ;;  %vm1172_vm0 = vcmask 261120  }
 0x159   :  { %990 = vmatpush.bf16.msrb.mxu1 %v1701_v2  ;;  %1478 = vmatmul.msk.bf16.vlgmr.msra.gmra.mxu2 %vm2344_vm1, %v2700_v0  ;;  %v666_v2 = vpop.f32.mrf.mxu0  ;;  %vm1174_vm1 = vcmask 523264  }
 0x15a   :  { %1003 = vmatpush.bf16.msrb.mxu2 %v1706_v4  ;;  %1016 = vmatpush.bf16.msrb.mxu3 %v1711_v5  ;;  %v667_v4 = vadd.f32 %v666_v2, %v654_v1  ;;  %v679_v5 = vpop.f32.mrf.mxu1  ;;  %v1608_v1 = vld [vmem:[%s2669_s1 + $0xa8] sm:$0xff]  ;;  %v1609_v2 = vld [vmem:[%s2670_s2 + $0xa0] sm:$0xff] }
 0x15b   :  { %1480 = vmatmul.msk.bf16.vlgmr.msra.gmra.mxu3 %vm1473_vm3, %v2700_v0 }
 0x15c   :  { %978 = vmatpush.bf16.msrb.mxu0 %v1718_v7  ;;  %v680_v63 = vadd.f32 %v679_v5, %v667_v4  ;;  %v707_v7 = vpop.f32.mrf.mxu2  ;;  %v1610_v4 = vld [vmem:[%s2669_s1 + $0x20] sm:$0xff] }
 0x15d   :  { %991 = vmatpush.bf16.msrb.mxu1 %v1725_v8  ;;  %v1611_v5 = vld [vmem:[%s2669_s1 + $0x60] sm:$0xff] }
 0x15e   :  { %1004 = vmatpush.bf16.msrb.mxu2 %v1730_v9  ;;  %1017 = vmatpush.bf16.msrb.mxu3 %v1736_v10  ;;  %v720_v9 = vpop.f32.mrf.mxu3 }
 0x15f   :  { %1153 = vrot.lane.b32.xlu2 %v680_v63, %s1665_s26  ;;  %v1612_v63 = vld [vmem:[%s2669_s1 + $0xa0] sm:$0xff] }
 0x160   :  { %979 = vmatpush.bf16.msrb.mxu0 %v1743_v11  ;;  %v721_v11 = vadd.f32 %v720_v9, %v707_v7 }
 0x161   :  { %992 = vmatpush.bf16.msrb.mxu1 %v1750_v12  ;;  %v668_v8 = vpop.f32.mrf.mxu0 }
 0x162   :  { %1005 = vmatpush.bf16.msrb.mxu2 %v1756_v13  ;;  %1018 = vmatpush.bf16.msrb.mxu3 %v1761_v14  ;;  %v681_v10 = vpop.f32.mrf.mxu1  ;;  %v964_v13 = vpop.permute.xlu1 %963 }
 0x163   :  { %vm965_vm4 = vcmp.eq.s32.totalorder %v2001_v54, %v964_v13  ;;  %vm966_vm5 = vcmp.eq.s32.totalorder %v2004_v55, %v964_v13  ;;  %vm967_vm6 = vcmp.eq.s32.totalorder %v2007_v56, %v964_v13  ;;  %v1614_v13 = vld [vmem:[%s2669_s1 + $0x18] sm:$0xff] }
 0x164   :  { %980 = vmatpush.bf16.msrb.mxu0 %v1767_v16  ;;  %v709_v12 = vpop.f32.mrf.mxu2  ;;  %vm2431_vm7 = vmpackc.low %vm965_vm4, %vm965_vm4 }
 0x165   :  { %993 = vmatpush.bf16.msrb.mxu1 %v1774_v17  ;;  %vm2437_vm8 = vmpackc.low %vm966_vm5, %vm966_vm5  ;;  %v1616_v17 = vld [vmem:[%s2669_s1 + $0x98] sm:$0xff] }
 0x166   :  { %1006 = vmatpush.bf16.msrb.mxu2 %v1781_v18  ;;  %1019 = vmatpush.bf16.msrb.mxu3 %v1786_v19  ;;  %v722_v14 = vpop.f32.mrf.mxu3  ;;  %vm2443_vm9 = vmpackc.low %vm967_vm6, %vm967_vm6  ;;  %v1581_v19 = vld [vmem:[%s2670_s2 + $0x38] sm:$0xff]  ;;  %v1617_v18 = vld [vmem:[%s2670_s2 + $0x90] sm:$0xff] }
 0x167   :  { %v1615_v14 = vld [vmem:[%s2669_s1 + $0x58] sm:$0xff] }
 0x168   :  { %981 = vmatpush.bf16.msrb.mxu0 %v1792_v20  ;;  %v1582_v20 = vld [vmem:[%s2670_s2 + $0x78] sm:$0xff] }
 0x169   :  { %994 = vmatpush.bf16.msrb.mxu1 %v1798_v21  ;;  %v1583_v21 = vld [vmem:[%s2670_s2 + $0x30] sm:$0xff] }
 0x16a   :  { %1007 = vmatpush.bf16.msrb.mxu2 %v1805_v23  ;;  %1020 = vmatpush.bf16.msrb.mxu3 %v1810_v24  ;;  %v1584_v23 = vld [vmem:[%s2670_s2 + $0x70] sm:$0xff] }
 0x16c   :  { %982 = vmatpush.bf16.msrb.mxu0 %v1817_v25 }
 0x16d   :  { %995 = vmatpush.bf16.msrb.mxu1 %v1823_v26 }
 0x16e   :  { %1008 = vmatpush.bf16.msrb.mxu2 %v1830_v27  ;;  %1021 = vmatpush.bf16.msrb.mxu3 %v1835_v28  ;;  %v1585_v27 = vld [vmem:[%s2670_s2 + $0x28] sm:$0xff] }
 0x16f   :  { %v1586_v28 = vld [vmem:[%s2670_s2 + $0x68] sm:$0xff] }
 0x170   :  { %983 = vmatpush.bf16.msrb.mxu0 %v1841_v29 }
 0x171   :  { %996 = vmatpush.bf16.msrb.mxu1 %v1847_v30  ;;  %v1587_v30 = vld [vmem:[%s2670_s2 + $0x20] sm:$0xff] }
 0x172   :  { %1009 = vmatpush.bf16.msrb.mxu2 %v1854_v31  ;;  %1022 = vmatpush.bf16.msrb.mxu3 %v1859_v32  ;;  %v1588_v31 = vld [vmem:[%s2670_s2 + $0x60] sm:$0xff] }
 0x174   :  { %984 = vmatpush.bf16.msrb.mxu0 %v1865_v33  ;;  %v733_v24 = vpop.f32.mrf.mxu0 }
 0x175   :  { %997 = vmatpush.bf16.msrb.mxu1 %v1871_v34  ;;  %v734_v25 = vadd.f32 %v733_v24, %v721_v11  ;;  %v746_v26 = vpop.f32.mrf.mxu1  ;;  %v1613_v11 = vld [vmem:[%s2670_s2 + $0x98] sm:$0xff] }
 0x176   :  { %1010 = vmatpush.bf16.msrb.mxu2 %v1883_v36  ;;  %1023 = vmatpush.bf16.msrb.mxu3 %v1888_v37  ;;  %v1589_v37 = vld [vmem:[%s2670_s2 + $0x18] sm:$0xff] }
 0x177   :  { %1485 = vmatmul.msk.bf16.vlgmr.msrb.gmra.mxu0 %vm2431_vm7, %v2700_v0  ;;  %v747_v29 = vadd.f32 %v746_v26, %v734_v25  ;;  %v1621_v25 = vld [vmem:[%s2670_s2 + $0x88] sm:$0xff] }
 0x178   :  { %1029 = vmatpush.bf16.msra.mxu0 %v1876_v35  ;;  %1487 = vmatmul.msk.bf16.vlgmr.msrb.gmra.mxu1 %vm2437_vm8, %v2700_v0  ;;  %v1622_v26 = vld [vmem:[%s2669_s1 + $0x8] sm:$0xff] }
 0x179   :  { %1042 = vmatpush.bf16.msra.mxu1 %v1893_v38  ;;  %1489 = vmatmul.msk.bf16.vlgmr.msrb.gmra.mxu2 %vm2443_vm9, %v2700_v0 }
 0x17a   :  { %1070 = vmatpush.bf16.msra.mxu2 %v1581_v19  ;;  %1083 = vmatpush.bf16.msra.mxu3 %v1582_v20  ;;  %v1618_v19 = vld [vmem:[%s2669_s1 + $0x10] sm:$0xff] }
 0x17b   :  { %1491 = vmatmul.msk.bf16.vlgmr.msrb.gmra.mxu3 %vm2431_vm7, %v2700_v0  ;;  %v1619_v20 = vld [vmem:[%s2669_s1 + $0x50] sm:$0xff] }
 0x17c   :  { %1030 = vmatpush.bf16.msra.mxu0 %v1901_v39  ;;  %v759_v32 = vpop.f32.mrf.mxu2  ;;  %v735_v35 = vpop.f32.mrf.mxu0  ;;  %v1590_v39 = vld [vmem:[%s2670_s2 + $0x58] sm:$0xff] }
 0x17d   :  { %1043 = vmatpush.bf16.msra.mxu1 %v1910_v40  ;;  %v760_v33 = vadd.f32 %v759_v32, %v747_v29  ;;  %v748_v36 = vpop.f32.mrf.mxu1  ;;  %v1591_v40 = vld [vmem:[%s2670_s2 + $0x10] sm:$0xff]  ;;  %v1625_v29 = vld [vmem:[%s2670_s2 + $0x80] sm:$0xff] }
 0x17e   :  { %1071 = vmatpush.bf16.msra.mxu2 %v1583_v21  ;;  %1084 = vmatpush.bf16.msra.mxu3 %v1584_v23  ;;  %v772_v34 = vpop.f32.mrf.mxu3  ;;  %v1620_v21 = vld [vmem:[%s2669_s1 + $0x90] sm:$0xff] }
 0x17f   :  { %v2495_v38 = vadd.f32 %v772_v34, %v760_v33 }
 0x180   :  { %1031 = vmatpush.bf16.msra.mxu0 %v1917_v41  ;;  %v1592_v41 = vld [vmem:[%s2670_s2 + $0x50] sm:$0xff] }
 0x181   :  { %1044 = vmatpush.bf16.msra.mxu1 %v1924_v42 }
 0x182   :  { %1072 = vmatpush.bf16.msra.mxu2 %v1585_v27  ;;  %1085 = vmatpush.bf16.msra.mxu3 %v1586_v28  ;;  %v1623_v27 = vld [vmem:[%s2669_s1 + $0x48] sm:$0xff] }
 0x183   :  { %v1624_v28 = vld [vmem:[%s2669_s1 + $0x88] sm:$0xff] }
 0x184   :  { %1032 = vmatpush.bf16.msra.mxu0 %v1931_v43  ;;  %v761_v42 = vpop.f32.mrf.mxu2 }
 0x185   :  { %1045 = vmatpush.bf16.msra.mxu1 %v1938_v44  ;;  %v2509_v44 = vpop.permute.xlu2 %1056 }
 0x186   :  { %1073 = vmatpush.bf16.msra.mxu2 %v1587_v30  ;;  %1086 = vmatpush.bf16.msra.mxu3 %v1588_v31  ;;  %v774_v43 = vpop.f32.mrf.mxu3  ;;  %vm1058_vm10 = vcmp.eq.s32.totalorder %v2001_v54, %v2509_v44  ;;  %vm1059_vm11 = vcmp.eq.s32.totalorder %v2004_v55, %v2509_v44  ;;  %v1600_v55 = vld [vmem:[%s2669_s1 + $0xb8] sm:$0xff]  ;;  %vm1060_vm14 = vcmp.eq.s32.totalorder %v2007_v56, %v2509_v44  ;;  %v1626_v30 = vld [vmem:[%s2669_s1] sm:$0xff] }
 0x187   :  { %vm2533_vm12 = vmpackc.low %vm1058_vm10, %vm1058_vm10  ;;  %v1627_v31 = vld [vmem:[%s2669_s1 + $0x40] sm:$0xff] }
 0x188   :  { %1033 = vmatpush.bf16.msra.mxu0 %v1945_v45  ;;  %v1593_v45 = vld [vmem:[%s2670_s2 + $0x8] sm:$0xff]  ;;  %vm2543_vm13 = vmpackc.low %vm1059_vm11, %vm1059_vm11  ;;  %v1628_v56 = vld [vmem:[%s2669_s1 + $0x80] sm:$0xff] }
 0x189   :  { %1046 = vmatpush.bf16.msra.mxu1 %v1952_v46  ;;  %v1594_v46 = vld [vmem:[%s2670_s2 + $0x48] sm:$0xff]  ;;  %vm1503_vm15 = vmpackc.low %vm1060_vm14, %vm1060_vm14 }
 0x18a   :  { %1074 = vmatpush.bf16.msra.mxu2 %v1589_v37  ;;  %1087 = vmatpush.bf16.msra.mxu3 %v1590_v39 }
 0x18c   :  { %1034 = vmatpush.bf16.msra.mxu0 %v1959_v47  ;;  %v1595_v47 = vld [vmem:[%s2670_s2] sm:$0xff] }
 0x18d   :  { %1047 = vmatpush.bf16.msra.mxu1 %v1966_v48  ;;  %v1596_v48 = vld [vmem:[%s2670_s2 + $0x40] sm:$0xff] }
 0x18e   :  { %1075 = vmatpush.bf16.msra.mxu2 %v1591_v40  ;;  %1088 = vmatpush.bf16.msra.mxu3 %v1592_v41 }
 0x190   :  { %1035 = vmatpush.bf16.msra.mxu0 %v1973_v49  ;;  %v1597_v49 = vld [vmem:[%s2670_s2 + $0xb8] sm:$0xff]  ;;  %s1667_s2 = smov [#allocation2]  }
 0x191   :  { %1048 = vmatpush.bf16.msra.mxu1 %v1980_v50 }
 0x192   :  { %1076 = vmatpush.bf16.msra.mxu2 %v1593_v45  ;;  %1089 = vmatpush.bf16.msra.mxu3 %v1594_v46 }
 0x194   :  { %1036 = vmatpush.bf16.msra.mxu0 %v1992_v51  ;;  %v1598_v51 = vld [vmem:[%s2669_s1 + $0x38] sm:$0xff]  ;;  %v800_v59 = vpop.f32.mrf.mxu0 }
 0x195   :  { %1049 = vmatpush.bf16.msra.mxu1 %v1997_v52  ;;  %v1599_v52 = vld [vmem:[%s2669_s1 + $0x78] sm:$0xff]  ;;  %v813_v60 = vpop.f32.mrf.mxu1  ;;  %s1666_s1 = smov 96  }
 0x196   :  { %1077 = vmatpush.bf16.msra.mxu2 %v1595_v47  ;;  %1090 = vmatpush.bf16.msra.mxu3 %v1596_v48  ;;  %v814_v3 = vadd.f32 %v813_v60, %v800_v59 }
 0x197   :  { %1493 = vmatmul.msk.bf16.vlgmr.msra.gmra.mxu0 %vm2437_vm8, %v2700_v0 }
 0x198   :  { %1096 = vmatpush.bf16.msrb.mxu0 %v1597_v49  ;;  %1495 = vmatmul.msk.bf16.vlgmr.msra.gmra.mxu1 %vm2443_vm9, %v2700_v0 }
 0x199   :  { %1109 = vmatpush.bf16.msrb.mxu1 %v1598_v51  ;;  %1500 = vmatmul.msk.bf16.vlgmr.msra.gmra.mxu2 %vm2533_vm12, %v2700_v0 }
 0x19a   :  { %1122 = vmatpush.bf16.msrb.mxu2 %v1599_v52  ;;  %1135 = vmatpush.bf16.msrb.mxu3 %v1600_v55 }
 0x19b   :  { %1502 = vmatmul.msk.bf16.vlgmr.msra.gmra.mxu3 %vm2543_vm13, %v2700_v0 }
 0x19c   :  { %1097 = vmatpush.bf16.msrb.mxu0 %v1601_v22  ;;  %v826_v7 = vpop.f32.mrf.mxu2  ;;  %v802_v8 = vpop.f32.mrf.mxu0 }
 0x19d   :  { %1110 = vmatpush.bf16.msrb.mxu1 %v1602_v53  ;;  %v827_v9 = vadd.f32 %v826_v7, %v814_v3  ;;  %v815_v12 = vpop.f32.mrf.mxu1 }
 0x19e   :  { %1123 = vmatpush.bf16.msrb.mxu2 %v1603_v61  ;;  %1136 = vmatpush.bf16.msrb.mxu3 %v1604_v62  ;;  %v839_v10 = vpop.f32.mrf.mxu3 }
 0x19f   :  { %v840_v16 = vadd.f32 %v839_v10, %v827_v9 }
 0x1a0   :  { %1098 = vmatpush.bf16.msrb.mxu0 %v1605_v57 }
 0x1a1   :  { %1111 = vmatpush.bf16.msrb.mxu1 %v1606_v58 }
 0x1a2   :  { %1124 = vmatpush.bf16.msrb.mxu2 %v1607_v6  ;;  %1137 = vmatpush.bf16.msrb.mxu3 %v1608_v1 }
 0x1a4   :  { %1099 = vmatpush.bf16.msrb.mxu0 %v1609_v2  ;;  %v828_v23 = vpop.f32.mrf.mxu2 }
 0x1a5   :  { %1112 = vmatpush.bf16.msrb.mxu1 %v1610_v4 }
 0x1a6   :  { %1125 = vmatpush.bf16.msrb.mxu2 %v1611_v5  ;;  %1138 = vmatpush.bf16.msrb.mxu3 %v1612_v63  ;;  %v841_v24 = vpop.f32.mrf.mxu3 }
 0x1a8   :  { %1100 = vmatpush.bf16.msrb.mxu0 %v1613_v11 }
 0x1a9   :  { %1113 = vmatpush.bf16.msrb.mxu1 %v1614_v13 }
 0x1aa   :  { %1126 = vmatpush.bf16.msrb.mxu2 %v1615_v14  ;;  %1139 = vmatpush.bf16.msrb.mxu3 %v1616_v17 }
 0x1ac   :  { %1101 = vmatpush.bf16.msrb.mxu0 %v1617_v18 }
 0x1ad   :  { %1114 = vmatpush.bf16.msrb.mxu1 %v1618_v19 }
 0x1ae   :  { %1127 = vmatpush.bf16.msrb.mxu2 %v1619_v20  ;;  %1140 = vmatpush.bf16.msrb.mxu3 %v1620_v21 }
 0x1b0   :  { %1102 = vmatpush.bf16.msrb.mxu0 %v1621_v25 }
 0x1b1   :  { %1115 = vmatpush.bf16.msrb.mxu1 %v1622_v26 }
 0x1b2   :  { %1128 = vmatpush.bf16.msrb.mxu2 %v1623_v27  ;;  %1141 = vmatpush.bf16.msrb.mxu3 %v1624_v28  ;;  %v1150_v28 = vpop.permute.xlu0 %1149 }
 0x1b4   :  { %1103 = vmatpush.bf16.msrb.mxu0 %v1625_v29  ;;  %v852_v32 = vpop.f32.mrf.mxu0 }
 0x1b5   :  { %1116 = vmatpush.bf16.msrb.mxu1 %v1626_v30  ;;  %v853_v33 = vadd.f32 %v852_v32, %v840_v16  ;;  %v865_v34 = vpop.f32.mrf.mxu1  ;;  %v1173_v30 = vsel %vm1172_vm0, %v2264_v15, %v1150_v28 }
 0x1b6   :  { %1129 = vmatpush.bf16.msrb.mxu2 %v1627_v31  ;;  %1142 = vmatpush.bf16.msrb.mxu3 %v1628_v56 }
 0x1b7   :  { %1504 = vmatmul.msk.bf16.vlgmr.msrb.gmra.mxu0 %vm1503_vm15, %v2700_v0  ;;  %v2656_v35 = vadd.f32 %v865_v34, %v853_v33 }
 0x1b8   :  { %1506 = vmatmul.msk.bf16.vlgmr.msrb.gmra.mxu1 %vm2533_vm12, %v2700_v0 }
 0x1b9   :  { %1508 = vmatmul.msk.bf16.vlgmr.msrb.gmra.mxu2 %vm2543_vm13, %v2700_v0  ;;  %1510 = vmatmul.msk.bf16.vlgmr.msrb.gmra.mxu3 %vm1503_vm15, %v2700_v0  ;;  %v1154_v29 = vpop.permute.xlu2 %1153 }
 0x1ba   :  { %v1175_v31 = vsel %vm1174_vm1, %v1173_v30, %v1154_v29 }
 0x1bc   :  { %v893_v36 = vpop.f32.mrf.mxu2  ;;  %v854_v37 = vpop.f32.mrf.mxu0 }
 0x1bd   :  { %v867_v40 = vpop.f32.mrf.mxu1 }
 0x1be   :  { %v906_v39 = vpop.f32.mrf.mxu3 }
 0x1bf   :  { %v907_v43 = vadd.f32 %v906_v39, %v893_v36 }
 0x1c4   :  { %v895_v41 = vpop.f32.mrf.mxu2 }
 0x1c6   :  { %v908_v42 = vpop.f32.mrf.mxu3 }
 0x1d4   :  { %v919_v44 = vpop.f32.mrf.mxu0 }
 0x1d5   :  { %v932_v45 = vpop.f32.mrf.mxu1  ;;  %v920_v46 = vadd.f32 %v919_v44, %v907_v43 }
 0x1d7   :  { %v933_v47 = vadd.f32 %v932_v45, %v920_v46 }
 0x1dc   :  { %v945_v48 = vpop.f32.mrf.mxu2  ;;  %v921_v0 = vpop.f32.mrf.mxu0 }
 0x1dd   :  { %v946_v49 = vadd.f32 %v945_v48, %v933_v47  ;;  %v934_v51 = vpop.f32.mrf.mxu1 }
 0x1de   :  { %v958_v50 = vpop.f32.mrf.mxu3 }
 0x1df   :  { %v959_v52 = vadd.f32 %v958_v50, %v946_v49 }
 0x1e1   :  { %1161 = vrot.lane.b32.xlu1 %v959_v52, %s1664_s25  ;;  %s1188_s25 = sshll.u32 %s1667_s2, 4  ;;  %s1189_s25 = int_to_ptr.vmem [resolvable:$true] %s1188_s25 }
 0x1e4   :  { %v947_v54 = vpop.f32.mrf.mxu2 }
 0x1e6   :  { %v960_v55 = vpop.f32.mrf.mxu3 }
 0x1e9   :  { %1157 = vrot.lane.b32.xlu1 %v2495_v38, %s1666_s1 }
 0x1f4   :  { %v986_v22 = vpop.f32.mrf.mxu0 }
 0x1f5   :  { %v999_v53 = vpop.f32.mrf.mxu1 }
 0x1f6   :  { %v1000_v6 = vadd.f32 %v999_v53, %v986_v22 }
 0x1fc   :  { %v1012_v61 = vpop.f32.mrf.mxu2  ;;  %v988_v62 = vpop.f32.mrf.mxu0 }
 0x1fd   :  { %v1001_v57 = vpop.f32.mrf.mxu1  ;;  %v1013_v3 = vadd.f32 %v1012_v61, %v1000_v6 }
 0x1fe   :  { %v1025_v59 = vpop.f32.mrf.mxu3 }
 0x1ff   :  { %v1026_v1 = vadd.f32 %v1025_v59, %v1013_v3 }
 0x204   :  { %v1014_v60 = vpop.f32.mrf.mxu2 }
 0x206   :  { %v1027_v58 = vpop.f32.mrf.mxu3 }
 0x214   :  { %v1038_v2 = vpop.f32.mrf.mxu0 }
 0x215   :  { %v1039_v4 = vadd.f32 %v1038_v2, %v1026_v1  ;;  %v1051_v5 = vpop.f32.mrf.mxu1 }
 0x217   :  { %v1052_v63 = vadd.f32 %v1051_v5, %v1039_v4 }
 0x219   :  { %1165 = vrot.lane.b32.xlu0 %v1052_v63, %s1665_s26 }
 0x21c   :  { %v1079_v7 = vpop.f32.mrf.mxu2  ;;  %v1040_v8 = vpop.f32.mrf.mxu0 }
 0x21d   :  { %v1053_v9 = vpop.f32.mrf.mxu1 }
 0x21e   :  { %v1092_v38 = vpop.f32.mrf.mxu3 }
 0x21f   :  { %v1093_v12 = vadd.f32 %v1092_v38, %v1079_v7 }
 0x224   :  { %v1081_v10 = vpop.f32.mrf.mxu2 }
 0x226   :  { %v1094_v11 = vpop.f32.mrf.mxu3 }
 0x234   :  { %v1105_v13 = vpop.f32.mrf.mxu0 }
 0x235   :  { %v1118_v14 = vpop.f32.mrf.mxu1  ;;  %v1106_v16 = vadd.f32 %v1105_v13, %v1093_v12 }
 0x237   :  { %v1119_v17 = vadd.f32 %v1118_v14, %v1106_v16 }
 0x23c   :  { %v1131_v18 = vpop.f32.mrf.mxu2  ;;  %v1144_v20 = vpop.f32.mrf.mxu3 }
 0x23d   :  { %v1132_v19 = vadd.f32 %v1131_v18, %v1119_v17  ;;  %v1107_v21 = vpop.f32.mrf.mxu0  ;;  %v1120_v23 = vpop.f32.mrf.mxu1 }
 0x23f   :  { %v1145_v24 = vadd.f32 %v1144_v20, %v1132_v19 }
 0x241   :  { %1169 = vrot.lane.b32.xlu2 %v1145_v24, %s1666_s1 }
 0x244   :  { %v1133_v25 = vpop.f32.mrf.mxu2  ;;  %v1146_v26 = vpop.f32.mrf.mxu3 }
 0x253   :  { %v1162_v27 = vpop.permute.xlu1 %1161 }
 0x254   :  { %v1178_v34 = vsel %vm1172_vm0, %v2656_v35, %v1162_v27 }
 0x25b   :  { %v1158_v56 = vpop.permute.xlu1 %1157 }
 0x25c   :  { %v1177_v32 = vsel %vm1176_vm2, %v1175_v31, %v1158_v56 }
 0x25d   :  { %1181 = vst [vmem:[#allocation2] sm:$0xff] %v1177_v32 }
 0x28b   :  { %v1166_v33 = vpop.permute.xlu0 %1165 }
 0x28c   :  { %v1179_v36 = vsel %vm1174_vm1, %v1178_v34, %v1166_v33 }
 0x29b   :  { %v1170_v37 = vpop.permute.xlu2 %1169 }
 0x29c   :  { %v1180_v39 = vsel %vm1176_vm2, %v1179_v36, %v1170_v37 }
 0x29d   :  { %1182 = vst [vmem:[#allocation2 + $0x8] sm:$0xff] %v1180_v39 }
 0x29e   :  { %1193 = dma.vmem_to_hbm [thread:$0]  %s1189_s25, 256, %s1191_s19, [#allocation3]  }
 0x29f   :  { %1653 = dma.done.wait [#allocation3], 256  }
 0x2a0   :  { %1654 = vsyncadd [#allocation3], 4294967040 }
 0x2a1   :  { %1198 = vsyncpa [#allocation3], 1 }

</bundles_post_ra>
